<compile_context>
chip_gen: v7x
topology: tpu7x:2x2x1
jax: 0.10.0
libtpu: 0.0.40
codegen_flags: <defaults>
</compile_context>

<pallas_src>
import functools
import math

import jax
import jax.numpy as jnp
from jax import lax
from jax.experimental import pallas as pl
from jax.experimental.pallas import tpu as pltpu


# ----------------------------------------------------------------------------
# Helpers
# ----------------------------------------------------------------------------

def _pick_tile(dim, target, align):
    """Largest tile <= target that divides `dim` and is `align`-aligned;
    falls back to the full dimension (always a legal block size)."""
    if dim <= target:
        return dim
    t = (target // align) * align
    while t >= align:
        if dim % t == 0:
            return t
        t -= align
    return dim


def _layernorm(y, g, b, eps):
    mean = jnp.mean(y, axis=-1, keepdims=True)
    var = jnp.mean(jnp.square(y - mean), axis=-1, keepdims=True)
    return (y - mean) * jax.lax.rsqrt(var + eps) * g + b


def _linear_vmem_bytes(tm, tn, tk, act_bytes, out_bytes, fuse_ln, use_scratch):
    """Rough double-buffered VMEM footprint of one complex_linear grid step."""
    ins = 2 * tm * tk * act_bytes          # xr, xp tiles
    ins += 3 * tk * tn * 2                 # wr, wi, w_sum (bf16)
    ins += 2 * 8 * tn * 4                  # biases (sublane padded)
    if fuse_ln:
        ins += 2 * tm * tn * 4             # residual tiles (f32)
        ins += 2 * 8 * tn * 4              # gamma, beta
    outs = 2 * tm * tn * out_bytes
    scratch = 2 * tm * tn * 4 if use_scratch else 0
    return 2 * (ins + outs) + scratch      # x2 for double-buffering


def _select_tiles(m, n, k, *, fuse_ln, act_bytes, out_bytes, use_scratch,
                  budget=40 * 1024 * 1024):
    if fuse_ln:
        # LayerNorm fusion needs the full output row -> tn = n; keep tm/tk
        # modest so the fused-LN working set fits v7x's 64 MiB VMEM.
        tm_t, tn_t, tk_t = 128, n, 256
    else:
        # Weights are re-streamed M/tm times: favour a large tm (helps v5e HBM).
        tm_t, tn_t, tk_t = 512, 512, 512
    while True:
        tm = _pick_tile(m, tm_t, 8)
        tn = n if fuse_ln else _pick_tile(n, tn_t, 128)
        tk = _pick_tile(k, tk_t, 128)
        est = _linear_vmem_bytes(tm, tn, tk, act_bytes, out_bytes, fuse_ln,
                                 use_scratch)
        if est <= budget:
            return tm, tn, tk, est
        if tm_t > 64:
            tm_t //= 2
        elif tk_t > 128:
            tk_t //= 2
        elif (not fuse_ln) and tn_t > 128:
            tn_t //= 2
        else:
            # TODO(synk): for extremely large d_model, split the LN epilogue
            # into a separate row kernel instead of shrinking further.
            return tm, tn, tk, est


# ----------------------------------------------------------------------------
# Fused complex linear kernel
#   (xr + i*xp) @ (Wr + i*Wi) + (br + i*bi)
#   optional ReLU; optional fused residual-add + LayerNorm epilogue.
#   Gauss 3-multiply: t1 = xr Wr, t2 = xp Wi, t3 = (xr+xp)(Wr+Wi)
#     real = t1 - t2, phase = t3 - t1 - t2
#   (bf16 cancellation in the phase part is a known, accepted approximation.)
# ----------------------------------------------------------------------------

def _complex_linear_kernel(*refs, activation, fuse_ln, ln_eps, use_scratch):
    if fuse_ln:
        (xr_ref, xp_ref, wr_ref, wi_ref, ws_ref, br_ref, bi_ref,
         rr_ref, rp_ref, g_ref, beta_ref, or_ref, op_ref) = refs[:13]
        rest = refs[13:]
    else:
        (xr_ref, xp_ref, wr_ref, wi_ref, ws_ref, br_ref, bi_ref,
         or_ref, op_ref) = refs[:9]
        rest = refs[9:]
        rr_ref = rp_ref = g_ref = beta_ref = None
    if use_scratch:
        accr_ref, accp_ref = rest
    else:
        # Output block index ignores k -> resident across the K axis; accumulate
        # directly into the (f32) output refs, no scratch needed.
        accr_ref, accp_ref = or_ref, op_ref

    k = pl.program_id(2)

    @pl.when(k == 0)
    def _():
        accr_ref[...] = jnp.zeros_like(accr_ref)
        accp_ref[...] = jnp.zeros_like(accp_ref)

    xr = xr_ref[...]
    xp = xp_ref[...]
    xr_b = xr.astype(jnp.bfloat16)
    xp_b = xp.astype(jnp.bfloat16)
    # Sum in f32 (v5e has no bf16 VPU), cast only the MXU operand to bf16.
    xs_b = (xr.astype(jnp.float32) + xp.astype(jnp.float32)).astype(jnp.bfloat16)

    # Weights arrive pre-cast bf16 (wr, wi) with the pre-summed ws = wr + wi.
    t1 = jnp.dot(xr_b, wr_ref[...], preferred_element_type=jnp.float32)
    t2 = jnp.dot(xp_b, wi_ref[...], preferred_element_type=jnp.float32)
    t3 = jnp.dot(xs_b, ws_ref[...], preferred_element_type=jnp.float32)

    accr_ref[...] += t1 - t2
    accp_ref[...] += t3 - t1 - t2

    # Bias / ReLU / residual + LayerNorm only on the final K step.
    @pl.when(k == pl.num_programs(2) - 1)
    def _():
        out_r = accr_ref[...] + br_ref[...]
        out_p = accp_ref[...] + bi_ref[...]
        if activation == "relu":
            out_r = jnp.maximum(out_r, 0.0)
            out_p = jnp.maximum(out_p, 0.0)
        if fuse_ln:
            g = g_ref[...]
            beta = beta_ref[...]
            out_r = _layernorm(out_r + rr_ref[...], g, beta, ln_eps)
            out_p = _layernorm(out_p + rp_ref[...], g, beta, ln_eps)
        or_ref[...] = out_r.astype(or_ref.dtype)
        op_ref[...] = out_p.astype(op_ref.dtype)


def complex_linear(xr, xp, wr, wi, ws, br, bi, *, activation=None,
                   out_dtype=jnp.float32,
                   res_r=None, res_p=None, ln_g=None, ln_b=None, ln_eps=1e-5):
    m, kdim = xr.shape
    n = wr.shape[1]
    fuse_ln = ln_g is not None
    act_bytes = jnp.dtype(xr.dtype).itemsize
    out_bytes = jnp.dtype(out_dtype).itemsize
    use_scratch = out_dtype != jnp.float32   # bf16 out -> f32 scratch accum

    tm, tn, tk, est = _select_tiles(m, n, kdim, fuse_ln=fuse_ln,
                                    act_bytes=act_bytes, out_bytes=out_bytes,
                                    use_scratch=use_scratch)
    grid = (m // tm, n // tn, kdim // tk)

    x_spec = pl.BlockSpec((tm, tk), lambda i, j, k: (i, k))
    w_spec = pl.BlockSpec((tk, tn), lambda i, j, k: (k, j))
    b_spec = pl.BlockSpec((1, tn), lambda i, j, k: (0, j))
    o_spec = pl.BlockSpec((tm, tn), lambda i, j, k: (i, j))

    in_specs = [x_spec, x_spec, w_spec, w_spec, w_spec, b_spec, b_spec]
    args = [xr, xp, wr, wi, ws, br, bi]
    if fuse_ln:
        in_specs += [o_spec, o_spec, b_spec, b_spec]
        args += [res_r, res_p, ln_g, ln_b]

    scratch = ([pltpu.VMEM((tm, tn), jnp.float32)] * 2) if use_scratch else []

    kernel = functools.partial(_complex_linear_kernel, activation=activation,
                               fuse_ln=fuse_ln, ln_eps=ln_eps,
                               use_scratch=use_scratch)
    out_sd = jax.ShapeDtypeStruct((m, n), out_dtype)
    vmem_limit = min(int(est * 1.3) + (2 << 20), 64 << 20)
    return pl.pallas_call(
        kernel,
        out_shape=(out_sd, out_sd),
        grid_spec=pltpu.PrefetchScalarGridSpec(
            num_scalar_prefetch=0,
            grid=grid,
            in_specs=in_specs,
            out_specs=[o_spec, o_spec],
            scratch_shapes=scratch),
        compiler_params=pltpu.CompilerParams(
            dimension_semantics=("parallel", "parallel", "arbitrary"),
            vmem_limit_bytes=vmem_limit),
    )(*args)


# ----------------------------------------------------------------------------
# Flash-style complex attention.
#   Inputs: head-major QKV (B, 3*n_head, S, dk) in bf16, Q already scaled by
#   1/sqrt(dk) (folded into the projection weights).
#   Grid = (batch, head, q_tiles, kv_tiles), online softmax over the kv axis.
#   scores = Re(Q K^H) = qr kr^T + qp kp^T; outputs P@Vr, P@Vp in bf16.
# ----------------------------------------------------------------------------

def _flash_attn_kernel(qr_ref, qp_ref, kr_ref, kp_ref, vr_ref, vp_ref,
                       or_ref, op_ref, m_sc, l_sc, accr_sc, accp_sc):
    ki = pl.program_id(3)

    @pl.when(ki == 0)
    def _():
        m_sc[...] = jnp.full_like(m_sc, -jnp.inf)
        l_sc[...] = jnp.zeros_like(l_sc)
        accr_sc[...] = jnp.zeros_like(accr_sc)
        accp_sc[...] = jnp.zeros_like(accp_sc)

    dn = (((1,), (1,)), ((), ()))   # contract last dims: (tq,dk)x(tkv,dk)->(tq,tkv)
    s = (lax.dot_general(qr_ref[0, 0], kr_ref[0, 0], dn,
                         preferred_element_type=jnp.float32)
         + lax.dot_general(qp_ref[0, 0], kp_ref[0, 0], dn,
                           preferred_element_type=jnp.float32))
    # TODO(synk): attention mask not applied (semantics of `mask` unknown).

    m_prev = m_sc[...]
    m_new = jnp.maximum(m_prev, jnp.max(s, axis=-1, keepdims=True))
    alpha = jnp.exp(m_prev - m_new)
    p = jnp.exp(s - m_new)
    l_sc[...] = alpha * l_sc[...] + jnp.sum(p, axis=-1, keepdims=True)
    p_b = p.astype(jnp.bfloat16)
    accr_sc[...] = alpha * accr_sc[...] + jnp.dot(
        p_b, vr_ref[0, 0], preferred_element_type=jnp.float32)
    accp_sc[...] = alpha * accp_sc[...] + jnp.dot(
        p_b, vp_ref[0, 0], preferred_element_type=jnp.float32)
    m_sc[...] = m_new

    @pl.when(ki == pl.num_programs(3) - 1)
    def _():
        inv_l = pl.reciprocal(l_sc[...], approx=True)
        or_ref[0, 0] = (accr_sc[...] * inv_l).astype(or_ref.dtype)
        op_ref[0, 0] = (accp_sc[...] * inv_l).astype(op_ref.dtype)


def complex_flash_attention(qkv_r, qkv_p, *, n_head):
    b, h3, s, dk = qkv_r.shape
    assert h3 == 3 * n_head
    tq = _pick_tile(s, 256, 8)
    tkv = _pick_tile(s, 512, 8)
    grid = (b, n_head, s // tq, s // tkv)

    q_spec = pl.BlockSpec((1, 1, tq, dk),
                          lambda bi, h, qi, ki: (bi, h, qi, 0))
    k_spec = pl.BlockSpec((1, 1, tkv, dk),
                          lambda bi, h, qi, ki: (bi, n_head + h, ki, 0))
    v_spec = pl.BlockSpec((1, 1, tkv, dk),
                          lambda bi, h, qi, ki: (bi, 2 * n_head + h, ki, 0))
    o_spec = pl.BlockSpec((1, 1, tq, dk),
                          lambda bi, h, qi, ki: (bi, h, qi, 0))

    out_sd = jax.ShapeDtypeStruct((b, n_head, s, dk), jnp.bfloat16)
    scratch = [pltpu.VMEM((tq, 1), jnp.float32),
               pltpu.VMEM((tq, 1), jnp.float32),
               pltpu.VMEM((tq, dk), jnp.float32),
               pltpu.VMEM((tq, dk), jnp.float32)]

    est = (2 * (2 * tq * dk * 2 + 4 * tkv * dk * 2 + 2 * tq * dk * 2)
           + 2 * tq * 4 + 2 * tq * dk * 4)
    vmem_limit = min(int(est * 2) + (4 << 20), 64 << 20)

    return pl.pallas_call(
        _flash_attn_kernel,
        out_shape=(out_sd, out_sd),
        grid_spec=pltpu.PrefetchScalarGridSpec(
            num_scalar_prefetch=0,
            grid=grid,
            in_specs=[q_spec, q_spec, k_spec, k_spec, v_spec, v_spec],
            out_specs=[o_spec, o_spec],
            scratch_shapes=scratch),
        compiler_params=pltpu.CompilerParams(
            dimension_semantics=("parallel", "parallel", "parallel", "arbitrary"),
            vmem_limit_bytes=vmem_limit),
    )(qkv_r, qkv_p, qkv_r, qkv_p, qkv_r, qkv_p)


# ----------------------------------------------------------------------------
# Parameters: plain init (PyTorch-like), then a one-time kernel-ready prep.
# ----------------------------------------------------------------------------

def init_params(key, d_model, d_ffn, n_head):
    del n_head  # static, passed separately to the forward fn

    def lin(k, d_in, d_out):
        k1, k2, k3, k4 = jax.random.split(k, 4)
        s = 0.02
        return dict(
            wr=jax.random.normal(k1, (d_in, d_out), jnp.float32) * s,
            wi=jax.random.normal(k2, (d_in, d_out), jnp.float32) * s,
            br=jax.random.normal(k3, (d_out,), jnp.float32) * s,
            bi=jax.random.normal(k4, (d_out,), jnp.float32) * s,
        )

    keys = jax.random.split(key, 8)
    wq = lin(keys[0], d_model, d_model)
    wk = lin(keys[1], d_model, d_model)
    wv = lin(keys[2], d_model, d_model)
    # Q/K/V fused along the output dim: one projection kernel instead of three.
    wqkv = dict(
        wr=jnp.concatenate([wq["wr"], wk["wr"], wv["wr"]], axis=1),
        wi=jnp.concatenate([wq["wi"], wk["wi"], wv["wi"]], axis=1),
        br=jnp.concatenate([wq["br"], wk["br"], wv["br"]], axis=0),
        bi=jnp.concatenate([wq["bi"], wk["bi"], wv["bi"]], axis=0),
    )
    return dict(
        wqkv=wqkv,
        wo=lin(keys[3], d_model, d_model),
        ffn1=lin(keys[4], d_model, d_ffn),
        ffn2=lin(keys[5], d_ffn, d_model),
        norm1_g=jnp.ones((d_model,), jnp.float32),
        norm1_b=jnp.zeros((d_model,), jnp.float32),
        norm2_g=jnp.ones((d_model,), jnp.float32),
        norm2_b=jnp.zeros((d_model,), jnp.float32),
    )


def prepare_params(params, n_head):
    """One-time prep: fold 1/sqrt(dk) into Q, cast weights to bf16, precompute
    the Gauss sum w_sum = wr + wi in bf16, reshape biases / LN params."""
    d_model = params["norm1_g"].shape[0]
    dk = d_model // n_head
    scale = 1.0 / math.sqrt(dk)

    def prep(p, q_cols=None):
        wr, wi, br, bi = p["wr"], p["wi"], p["br"], p["bi"]
        if q_cols is not None:
            s = jnp.concatenate(
                [jnp.full((q_cols,), scale, jnp.float32),
                 jnp.ones((wr.shape[1] - q_cols,), jnp.float32)])
            wr, wi, br, bi = wr * s, wi * s, br * s, bi * s
        return dict(
            wr=wr.astype(jnp.bfloat16),
            wi=wi.astype(jnp.bfloat16),
            ws=(wr + wi).astype(jnp.bfloat16),
            br=br.reshape(1, -1),
            bi=bi.reshape(1, -1),
        )

    return dict(
        wqkv=prep(params["wqkv"], q_cols=d_model),
        wo=prep(params["wo"]),
        ffn1=prep(params["ffn1"]),
        ffn2=prep(params["ffn2"]),
        norm1_g=params["norm1_g"].reshape(1, -1),
        norm1_b=params["norm1_b"].reshape(1, -1),
        norm2_g=params["norm2_g"].reshape(1, -1),
        norm2_b=params["norm2_b"].reshape(1, -1),
    )


# ----------------------------------------------------------------------------
# EncoderLayer forward (prepared params + glue in plain JAX, hot paths Pallas)
# ----------------------------------------------------------------------------

def encoder_layer_forward(params, x_real, x_phase, mask=None, *, n_head):
    del mask  # TODO(synk): attention mask not applied (semantics unknown).
    b, s, d_model = x_real.shape
    dk = d_model // n_head
    xr2 = x_real.reshape(b * s, d_model)
    xp2 = x_phase.reshape(b * s, d_model)

    # --- self attention -----------------------------------------------------
    p = params["wqkv"]
    # bf16 QKV output: halves the attention-input DMA / VMEM footprint.
    qkv_r, qkv_p = complex_linear(xr2, xp2, p["wr"], p["wi"], p["ws"],
                                  p["br"], p["bi"], out_dtype=jnp.bfloat16)
    # Head-major layout (B, 3*n_head, S, dk): every attention block is a full
    # lane-aligned dk slab; heads become a grid axis (megacore-friendly).
    qkv_r = qkv_r.reshape(b, s, 3 * n_head, dk).transpose(0, 2, 1, 3)
    qkv_p = qkv_p.reshape(b, s, 3 * n_head, dk).transpose(0, 2, 1, 3)

    ar, ap = complex_flash_attention(qkv_r, qkv_p, n_head=n_head)
    ar = ar.transpose(0, 2, 1, 3).reshape(b * s, d_model)
    ap = ap.transpose(0, 2, 1, 3).reshape(b * s, d_model)

    # Output projection + dropout_1(identity) + residual + norm_1, fused.
    po = params["wo"]
    h1r, h1p = complex_linear(ar, ap, po["wr"], po["wi"], po["ws"],
                              po["br"], po["bi"],
                              res_r=xr2, res_p=xp2,
                              ln_g=params["norm1_g"], ln_b=params["norm1_b"])

    # --- position-wise FFN --------------------------------------------------
    p1, p2 = params["ffn1"], params["ffn2"]
    fr, fp = complex_linear(h1r, h1p, p1["wr"], p1["wi"], p1["ws"],
                            p1["br"], p1["bi"],
                            activation="relu", out_dtype=jnp.bfloat16)
    # FFN-2 + dropout_2(identity) + residual + norm_2, fused.
    o_r, o_p = complex_linear(fr, fp, p2["wr"], p2["wi"], p2["ws"],
                              p2["br"], p2["bi"],
                              res_r=h1r, res_p=h1p,
                              ln_g=params["norm2_g"], ln_b=params["norm2_b"])
    return o_r.reshape(b, s, d_model), o_p.reshape(b, s, d_model)


if __name__ == "__main__":
    d_model, d_ffn, n_head = 32, 64, 4
    B, S = 2, 8

    key = jax.random.PRNGKey(0)
    k_params, k_xr, k_xp = jax.random.split(key, 3)
    raw_params = init_params(k_params, d_model, d_ffn, n_head)
    params = jax.tree_util.tree_map(
        jax.block_until_ready, prepare_params(raw_params, n_head))
    x_real = jax.random.normal(k_xr, (B, S, d_model), jnp.float32)
    x_phase = jax.random.normal(k_xp, (B, S, d_model), jnp.float32)

    fwd = jax.jit(functools.partial(encoder_layer_forward, n_head=n_head))
    out_real, out_phase = fwd(params, x_real, x_phase)
    jax.block_until_ready((out_real, out_phase))

    assert out_real.shape == (B, S, d_model) and out_phase.shape == (B, S, d_model)
    assert bool(jnp.all(jnp.isfinite(out_real))) and bool(jnp.all(jnp.isfinite(out_phase)))
    print("KERNEL_OK")
</pallas_src>

<mosaic_0001>
module attributes {stable_mosaic.version = 11 : i64} {
  func.func @_flash_attn_kernel(%arg0: i32, %arg1: i32, %arg2: i32, %arg3: i32, %arg4: memref<1x1x8x8xbf16, #tpu.memory_space<vmem>>, %arg5: memref<1x1x8x8xbf16, #tpu.memory_space<vmem>>, %arg6: memref<1x1x8x8xbf16, #tpu.memory_space<vmem>>, %arg7: memref<1x1x8x8xbf16, #tpu.memory_space<vmem>>, %arg8: memref<1x1x8x8xbf16, #tpu.memory_space<vmem>>, %arg9: memref<1x1x8x8xbf16, #tpu.memory_space<vmem>>, %arg10: memref<1x1x8x8xbf16, #tpu.memory_space<vmem>>, %arg11: memref<1x1x8x8xbf16, #tpu.memory_space<vmem>>, %arg12: memref<8x1xf32, #tpu.memory_space<vmem>>, %arg13: memref<8x1xf32, #tpu.memory_space<vmem>>, %arg14: memref<8x8xf32, #tpu.memory_space<vmem>>, %arg15: memref<8x8xf32, #tpu.memory_space<vmem>>) attributes {dimension_semantics = [#tpu.dimension_semantics<parallel>, #tpu.dimension_semantics<parallel>, #tpu.dimension_semantics<parallel>, #tpu.dimension_semantics<arbitrary>], iteration_bounds = array<i64: 2, 4, 1, 1>, scalar_prefetch = 0 : i64, scratch_operands = 4 : i64, tpu.core_type = #tpu.core_type<tc>, window_params = [{transform_indices = @transform_0, window_bounds = array<i64: 1, 1, 8, 8>}, {transform_indices = @transform_1, window_bounds = array<i64: 1, 1, 8, 8>}, {transform_indices = @transform_2, window_bounds = array<i64: 1, 1, 8, 8>}, {transform_indices = @transform_3, window_bounds = array<i64: 1, 1, 8, 8>}, {transform_indices = @transform_4, window_bounds = array<i64: 1, 1, 8, 8>}, {transform_indices = @transform_5, window_bounds = array<i64: 1, 1, 8, 8>}, {transform_indices = @transform_6, window_bounds = array<i64: 1, 1, 8, 8>}, {transform_indices = @transform_7, window_bounds = array<i64: 1, 1, 8, 8>}]} {
    %c0_i32 = arith.constant 0 : i32
    %0 = arith.cmpi eq, %arg3, %c0_i32 : i32
    %1 = arith.extui %0 : i1 to i32
    %c0_i32_0 = arith.constant 0 : i32
    %2 = arith.cmpi ne, %1, %c0_i32_0 : i32
    scf.if %2 {
      %cst_47 = arith.constant 0xFF800000 : f32
      %50 = vector.broadcast %cst_47 : f32 to vector<8x1xf32>
      %c0_48 = arith.constant 0 : index
      %c0_49 = arith.constant 0 : index
      %51 = vector.load %arg12[%c0_48, %c0_49] : memref<8x1xf32, #tpu.memory_space<vmem>>, vector<8x1xf32>
      tpu.vector_store %arg12[%c0_48, %c0_49], %50 {strides = array<i32>} : memref<8x1xf32, #tpu.memory_space<vmem>>, vector<8x1xf32>,
      %cst_50 = arith.constant 0.000000e+00 : f32
      %52 = vector.broadcast %cst_50 : f32 to vector<8x1xf32>
      %c0_51 = arith.constant 0 : index
      %c0_52 = arith.constant 0 : index
      %53 = vector.load %arg13[%c0_51, %c0_52] : memref<8x1xf32, #tpu.memory_space<vmem>>, vector<8x1xf32>
      tpu.vector_store %arg13[%c0_51, %c0_52], %52 {strides = array<i32>} : memref<8x1xf32, #tpu.memory_space<vmem>>, vector<8x1xf32>,
      %cst_53 = arith.constant 0.000000e+00 : f32
      %54 = vector.broadcast %cst_53 : f32 to vector<8x8xf32>
      %c0_54 = arith.constant 0 : index
      %c0_55 = arith.constant 0 : index
      %55 = vector.load %arg14[%c0_54, %c0_55] : memref<8x8xf32, #tpu.memory_space<vmem>>, vector<8x8xf32>
      tpu.vector_store %arg14[%c0_54, %c0_55], %54 {strides = array<i32>} : memref<8x8xf32, #tpu.memory_space<vmem>>, vector<8x8xf32>,
      %cst_56 = arith.constant 0.000000e+00 : f32
      %56 = vector.broadcast %cst_56 : f32 to vector<8x8xf32>
      %c0_57 = arith.constant 0 : index
      %c0_58 = arith.constant 0 : index
      %57 = vector.load %arg15[%c0_57, %c0_58] : memref<8x8xf32, #tpu.memory_space<vmem>>, vector<8x8xf32>
      tpu.vector_store %arg15[%c0_57, %c0_58], %56 {strides = array<i32>} : memref<8x8xf32, #tpu.memory_space<vmem>>, vector<8x8xf32>,
    } else {
    }
    %c0 = arith.constant 0 : index
    %c0_1 = arith.constant 0 : index
    %c0_2 = arith.constant 0 : index
    %c0_3 = arith.constant 0 : index
    %3 = vector.load %arg4[%c0, %c0_1, %c0_2, %c0_3] : memref<1x1x8x8xbf16, #tpu.memory_space<vmem>>, vector<1x1x8x8xbf16>
    %4 = vector.shape_cast %3 : vector<1x1x8x8xbf16> to vector<8x8xbf16>
    %c0_4 = arith.constant 0 : index
    %c0_5 = arith.constant 0 : index
    %c0_6 = arith.constant 0 : index
    %c0_7 = arith.constant 0 : index
    %5 = vector.load %arg6[%c0_4, %c0_5, %c0_6, %c0_7] : memref<1x1x8x8xbf16, #tpu.memory_space<vmem>>, vector<1x1x8x8xbf16>
    %6 = vector.shape_cast %5 : vector<1x1x8x8xbf16> to vector<8x8xbf16>
    %cst = arith.constant dense<0.000000e+00> : vector<8x8xf32>
    %7 = tpu.matmul %4, %6, %cst {dimension_numbers = #tpu.dot_dimension_numbers<[1], [1], [0], [0], [0, 0, 1, 0], [], []>} : vector<8x8xbf16>, vector<8x8xbf16>, vector<8x8xf32> -> vector<8x8xf32>
    %c0_8 = arith.constant 0 : index
    %c0_9 = arith.constant 0 : index
    %c0_10 = arith.constant 0 : index
    %c0_11 = arith.constant 0 : index
    %8 = vector.load %arg5[%c0_8, %c0_9, %c0_10, %c0_11] : memref<1x1x8x8xbf16, #tpu.memory_space<vmem>>, vector<1x1x8x8xbf16>
    %9 = vector.shape_cast %8 : vector<1x1x8x8xbf16> to vector<8x8xbf16>
    %c0_12 = arith.constant 0 : index
    %c0_13 = arith.constant 0 : index
    %c0_14 = arith.constant 0 : index
    %c0_15 = arith.constant 0 : index
    %10 = vector.load %arg7[%c0_12, %c0_13, %c0_14, %c0_15] : memref<1x1x8x8xbf16, #tpu.memory_space<vmem>>, vector<1x1x8x8xbf16>
    %11 = vector.shape_cast %10 : vector<1x1x8x8xbf16> to vector<8x8xbf16>
    %cst_16 = arith.constant dense<0.000000e+00> : vector<8x8xf32>
    %12 = tpu.matmul %9, %11, %cst_16 {dimension_numbers = #tpu.dot_dimension_numbers<[1], [1], [0], [0], [0, 0, 1, 0], [], []>} : vector<8x8xbf16>, vector<8x8xbf16>, vector<8x8xf32> -> vector<8x8xf32>
    %13 = arith.addf %7, %12 : vector<8x8xf32>
    %c0_17 = arith.constant 0 : index
    %c0_18 = arith.constant 0 : index
    %14 = vector.load %arg12[%c0_17, %c0_18] : memref<8x1xf32, #tpu.memory_space<vmem>>, vector<8x1xf32>
    %cst_19 = arith.constant dense<0xFF800000> : vector<8xf32>
    %15 = vector.multi_reduction <maximumf>, %13, %cst_19 [1] : vector<8x8xf32> to vector<8xf32>
    %16 = vector.shape_cast %15 : vector<8xf32> to vector<8x1xf32>
    %17 = arith.maximumf %14, %16 : vector<8x1xf32>
    %18 = arith.subf %14, %17 : vector<8x1xf32>
    %19 = math.exp %18 : vector<8x1xf32>
    %20 = vector.broadcast %17 : vector<8x1xf32> to vector<8x8xf32>
    %21 = arith.subf %13, %20 : vector<8x8xf32>
    %22 = math.exp %21 : vector<8x8xf32>
    %c0_20 = arith.constant 0 : index
    %c0_21 = arith.constant 0 : index
    %23 = vector.load %arg13[%c0_20, %c0_21] : memref<8x1xf32, #tpu.memory_space<vmem>>, vector<8x1xf32>
    %24 = arith.mulf %19, %23 : vector<8x1xf32>
    %cst_22 = arith.constant dense<0.000000e+00> : vector<8xf32>
    %25 = vector.multi_reduction <add>, %22, %cst_22 [1] : vector<8x8xf32> to vector<8xf32>
    %26 = vector.shape_cast %25 : vector<8xf32> to vector<8x1xf32>
    %27 = arith.addf %24, %26 : vector<8x1xf32>
    %c0_23 = arith.constant 0 : index
    %c0_24 = arith.constant 0 : index
    %28 = vector.load %arg13[%c0_23, %c0_24] : memref<8x1xf32, #tpu.memory_space<vmem>>, vector<8x1xf32>
    tpu.vector_store %arg13[%c0_23, %c0_24], %27 {strides = array<i32>} : memref<8x1xf32, #tpu.memory_space<vmem>>, vector<8x1xf32>,
    %29 = arith.truncf %22 : vector<8x8xf32> to vector<8x8xbf16>
    %c0_25 = arith.constant 0 : index
    %c0_26 = arith.constant 0 : index
    %30 = vector.load %arg14[%c0_25, %c0_26] : memref<8x8xf32, #tpu.memory_space<vmem>>, vector<8x8xf32>
    %31 = vector.broadcast %19 : vector<8x1xf32> to vector<8x8xf32>
    %32 = arith.mulf %31, %30 : vector<8x8xf32>
    %c0_27 = arith.constant 0 : index
    %c0_28 = arith.constant 0 : index
    %c0_29 = arith.constant 0 : index
    %c0_30 = arith.constant 0 : index
    %33 = vector.load %arg8[%c0_27, %c0_28, %c0_29, %c0_30] : memref<1x1x8x8xbf16, #tpu.memory_space<vmem>>, vector<1x1x8x8xbf16>
    %34 = vector.shape_cast %33 : vector<1x1x8x8xbf16> to vector<8x8xbf16>
    %cst_31 = arith.constant dense<0.000000e+00> : vector<8x8xf32>
    %35 = tpu.matmul %29, %34, %cst_31 {dimension_numbers = #tpu.dot_dimension_numbers<[1], [0], [0], [1], [0, 0, 1, 1], [], []>} : vector<8x8xbf16>, vector<8x8xbf16>, vector<8x8xf32> -> vector<8x8xf32>
    %36 = arith.addf %32, %35 : vector<8x8xf32>
    %c0_32 = arith.constant 0 : index
    %c0_33 = arith.constant 0 : index
    %37 = vector.load %arg14[%c0_32, %c0_33] : memref<8x8xf32, #tpu.memory_space<vmem>>, vector<8x8xf32>
    tpu.vector_store %arg14[%c0_32, %c0_33], %36 {strides = array<i32>} : memref<8x8xf32, #tpu.memory_space<vmem>>, vector<8x8xf32>,
    %c0_34 = arith.constant 0 : index
    %c0_35 = arith.constant 0 : index
    %38 = vector.load %arg15[%c0_34, %c0_35] : memref<8x8xf32, #tpu.memory_space<vmem>>, vector<8x8xf32>
    %39 = vector.broadcast %19 : vector<8x1xf32> to vector<8x8xf32>
    %40 = arith.mulf %39, %38 : vector<8x8xf32>
    %c0_36 = arith.constant 0 : index
    %c0_37 = arith.constant 0 : index
    %c0_38 = arith.constant 0 : index
    %c0_39 = arith.constant 0 : index
    %41 = vector.load %arg9[%c0_36, %c0_37, %c0_38, %c0_39] : memref<1x1x8x8xbf16, #tpu.memory_space<vmem>>, vector<1x1x8x8xbf16>
    %42 = vector.shape_cast %41 : vector<1x1x8x8xbf16> to vector<8x8xbf16>
    %cst_40 = arith.constant dense<0.000000e+00> : vector<8x8xf32>
    %43 = tpu.matmul %29, %42, %cst_40 {dimension_numbers = #tpu.dot_dimension_numbers<[1], [0], [0], [1], [0, 0, 1, 1], [], []>} : vector<8x8xbf16>, vector<8x8xbf16>, vector<8x8xf32> -> vector<8x8xf32>
    %44 = arith.addf %40, %43 : vector<8x8xf32>
    %c0_41 = arith.constant 0 : index
    %c0_42 = arith.constant 0 : index
    %45 = vector.load %arg15[%c0_41, %c0_42] : memref<8x8xf32, #tpu.memory_space<vmem>>, vector<8x8xf32>
    tpu.vector_store %arg15[%c0_41, %c0_42], %44 {strides = array<i32>} : memref<8x8xf32, #tpu.memory_space<vmem>>, vector<8x8xf32>,
    %c0_43 = arith.constant 0 : index
    %c0_44 = arith.constant 0 : index
    %46 = vector.load %arg12[%c0_43, %c0_44] : memref<8x1xf32, #tpu.memory_space<vmem>>, vector<8x1xf32>
    tpu.vector_store %arg12[%c0_43, %c0_44], %17 {strides = array<i32>} : memref<8x1xf32, #tpu.memory_space<vmem>>, vector<8x1xf32>,
    %c0_i32_45 = arith.constant 0 : i32
    %47 = arith.cmpi eq, %arg3, %c0_i32_45 : i32
    %48 = arith.extui %47 : i1 to i32
    %c0_i32_46 = arith.constant 0 : i32
    %49 = arith.cmpi ne, %48, %c0_i32_46 : i32
    scf.if %49 {
      %c0_47 = arith.constant 0 : index
      %c0_48 = arith.constant 0 : index
      %50 = vector.load %arg13[%c0_47, %c0_48] : memref<8x1xf32, #tpu.memory_space<vmem>>, vector<8x1xf32>
      %51 = tpu.reciprocal %50 {approx = true} : vector<8x1xf32> -> vector<8x1xf32>
      %c0_49 = arith.constant 0 : index
      %c0_50 = arith.constant 0 : index
      %52 = vector.load %arg14[%c0_49, %c0_50] : memref<8x8xf32, #tpu.memory_space<vmem>>, vector<8x8xf32>
      %53 = vector.broadcast %51 : vector<8x1xf32> to vector<8x8xf32>
      %54 = arith.mulf %52, %53 : vector<8x8xf32>
      %55 = arith.truncf %54 : vector<8x8xf32> to vector<8x8xbf16>
      %c0_51 = arith.constant 0 : index
      %c0_52 = arith.constant 0 : index
      %c0_53 = arith.constant 0 : index
      %c0_54 = arith.constant 0 : index
      %56 = vector.load %arg10[%c0_51, %c0_52, %c0_53, %c0_54] : memref<1x1x8x8xbf16, #tpu.memory_space<vmem>>, vector<1x1x8x8xbf16>
      %57 = vector.shape_cast %56 : vector<1x1x8x8xbf16> to vector<8x8xbf16>
      %58 = vector.shape_cast %55 : vector<8x8xbf16> to vector<1x1x8x8xbf16>
      tpu.vector_store %arg10[%c0_51, %c0_52, %c0_53, %c0_54], %58 {strides = array<i32>} : memref<1x1x8x8xbf16, #tpu.memory_space<vmem>>, vector<1x1x8x8xbf16>,
      %c0_55 = arith.constant 0 : index
      %c0_56 = arith.constant 0 : index
      %59 = vector.load %arg15[%c0_55, %c0_56] : memref<8x8xf32, #tpu.memory_space<vmem>>, vector<8x8xf32>
      %60 = vector.broadcast %51 : vector<8x1xf32> to vector<8x8xf32>
      %61 = arith.mulf %59, %60 : vector<8x8xf32>
      %62 = arith.truncf %61 : vector<8x8xf32> to vector<8x8xbf16>
      %c0_57 = arith.constant 0 : index
      %c0_58 = arith.constant 0 : index
      %c0_59 = arith.constant 0 : index
      %c0_60 = arith.constant 0 : index
      %63 = vector.load %arg11[%c0_57, %c0_58, %c0_59, %c0_60] : memref<1x1x8x8xbf16, #tpu.memory_space<vmem>>, vector<1x1x8x8xbf16>
      %64 = vector.shape_cast %63 : vector<1x1x8x8xbf16> to vector<8x8xbf16>
      %65 = vector.shape_cast %62 : vector<8x8xbf16> to vector<1x1x8x8xbf16>
      tpu.vector_store %arg11[%c0_57, %c0_58, %c0_59, %c0_60], %65 {strides = array<i32>} : memref<1x1x8x8xbf16, #tpu.memory_space<vmem>>, vector<1x1x8x8xbf16>,
    } else {
    }
    return
  }
  func.func @transform_0(%arg0: i32, %arg1: i32, %arg2: i32, %arg3: i32) -> (i32, i32, i32, i32) {
    %c0_i32 = arith.constant 0 : i32
    %c0_i32_0 = arith.constant 0 : i32
    return %arg0, %arg1, %arg2, %c0_i32 : i32, i32, i32, i32
  }
  func.func @transform_1(%arg0: i32, %arg1: i32, %arg2: i32, %arg3: i32) -> (i32, i32, i32, i32) {
    %c0_i32 = arith.constant 0 : i32
    %c0_i32_0 = arith.constant 0 : i32
    return %arg0, %arg1, %arg2, %c0_i32 : i32, i32, i32, i32
  }
  func.func @transform_2(%arg0: i32, %arg1: i32, %arg2: i32, %arg3: i32) -> (i32, i32, i32, i32) {
    %c4_i32 = arith.constant 4 : i32
    %0 = arith.addi %c4_i32, %arg1 : i32
    %c0_i32 = arith.constant 0 : i32
    %c0_i32_0 = arith.constant 0 : i32
    return %arg0, %0, %arg3, %c0_i32 : i32, i32, i32, i32
  }
  func.func @transform_3(%arg0: i32, %arg1: i32, %arg2: i32, %arg3: i32) -> (i32, i32, i32, i32) {
    %c4_i32 = arith.constant 4 : i32
    %0 = arith.addi %c4_i32, %arg1 : i32
    %c0_i32 = arith.constant 0 : i32
    %c0_i32_0 = arith.constant 0 : i32
    return %arg0, %0, %arg3, %c0_i32 : i32, i32, i32, i32
  }
  func.func @transform_4(%arg0: i32, %arg1: i32, %arg2: i32, %arg3: i32) -> (i32, i32, i32, i32) {
    %c8_i32 = arith.constant 8 : i32
    %0 = arith.addi %c8_i32, %arg1 : i32
    %c0_i32 = arith.constant 0 : i32
    %c0_i32_0 = arith.constant 0 : i32
    return %arg0, %0, %arg3, %c0_i32 : i32, i32, i32, i32
  }
  func.func @transform_5(%arg0: i32, %arg1: i32, %arg2: i32, %arg3: i32) -> (i32, i32, i32, i32) {
    %c8_i32 = arith.constant 8 : i32
    %0 = arith.addi %c8_i32, %arg1 : i32
    %c0_i32 = arith.constant 0 : i32
    %c0_i32_0 = arith.constant 0 : i32
    return %arg0, %0, %arg3, %c0_i32 : i32, i32, i32, i32
  }
  func.func @transform_6(%arg0: i32, %arg1: i32, %arg2: i32, %arg3: i32) -> (i32, i32, i32, i32) {
    %c0_i32 = arith.constant 0 : i32
    %c0_i32_0 = arith.constant 0 : i32
    return %arg0, %arg1, %arg2, %c0_i32 : i32, i32, i32, i32
  }
  func.func @transform_7(%arg0: i32, %arg1: i32, %arg2: i32, %arg3: i32) -> (i32, i32, i32, i32) {
    %c0_i32 = arith.constant 0 : i32
    %c0_i32_0 = arith.constant 0 : i32
    return %arg0, %arg1, %arg2, %c0_i32 : i32, i32, i32, i32
  }
}

module attributes {stable_mosaic.version = 11 : i64} {
  func.func @_complex_linear_kernel(%arg0: i32, %arg1: i32, %arg2: i32, %arg3: memref<16x32xf32, #tpu.memory_space<vmem>>, %arg4: memref<16x32xf32, #tpu.memory_space<vmem>>, %arg5: memref<32x96xbf16, #tpu.memory_space<vmem>>, %arg6: memref<32x96xbf16, #tpu.memory_space<vmem>>, %arg7: memref<32x96xbf16, #tpu.memory_space<vmem>>, %arg8: memref<1x96xf32, #tpu.memory_space<vmem>>, %arg9: memref<1x96xf32, #tpu.memory_space<vmem>>, %arg10: memref<16x96xbf16, #tpu.memory_space<vmem>>, %arg11: memref<16x96xbf16, #tpu.memory_space<vmem>>, %arg12: memref<16x96xf32, #tpu.memory_space<vmem>>, %arg13: memref<16x96xf32, #tpu.memory_space<vmem>>) attributes {dimension_semantics = [#tpu.dimension_semantics<parallel>, #tpu.dimension_semantics<parallel>, #tpu.dimension_semantics<arbitrary>], iteration_bounds = array<i64: 1, 1, 1>, scalar_prefetch = 0 : i64, scratch_operands = 2 : i64, tpu.core_type = #tpu.core_type<tc>, window_params = [{transform_indices = @transform_0, window_bounds = array<i64: 16, 32>}, {transform_indices = @transform_1, window_bounds = array<i64: 16, 32>}, {transform_indices = @transform_2, window_bounds = array<i64: 32, 96>}, {transform_indices = @transform_3, window_bounds = array<i64: 32, 96>}, {transform_indices = @transform_4, window_bounds = array<i64: 32, 96>}, {transform_indices = @transform_5, window_bounds = array<i64: 1, 96>}, {transform_indices = @transform_6, window_bounds = array<i64: 1, 96>}, {transform_indices = @transform_7, window_bounds = array<i64: 16, 96>}, {transform_indices = @transform_8, window_bounds = array<i64: 16, 96>}]} {
    %c0_i32 = arith.constant 0 : i32
    %0 = arith.cmpi eq, %arg2, %c0_i32 : i32
    %1 = arith.extui %0 : i1 to i32
    %c0_i32_0 = arith.constant 0 : i32
    %2 = arith.cmpi ne, %1, %c0_i32_0 : i32
    scf.if %2 {
      %cst_22 = arith.constant 0.000000e+00 : f32
      %27 = vector.broadcast %cst_22 : f32 to vector<16x96xf32>
      %c0_23 = arith.constant 0 : index
      %c0_24 = arith.constant 0 : index
      %28 = vector.load %arg12[%c0_23, %c0_24] : memref<16x96xf32, #tpu.memory_space<vmem>>, vector<16x96xf32>
      tpu.vector_store %arg12[%c0_23, %c0_24], %27 {strides = array<i32>} : memref<16x96xf32, #tpu.memory_space<vmem>>, vector<16x96xf32>,
      %cst_25 = arith.constant 0.000000e+00 : f32
      %29 = vector.broadcast %cst_25 : f32 to vector<16x96xf32>
      %c0_26 = arith.constant 0 : index
      %c0_27 = arith.constant 0 : index
      %30 = vector.load %arg13[%c0_26, %c0_27] : memref<16x96xf32, #tpu.memory_space<vmem>>, vector<16x96xf32>
      tpu.vector_store %arg13[%c0_26, %c0_27], %29 {strides = array<i32>} : memref<16x96xf32, #tpu.memory_space<vmem>>, vector<16x96xf32>,
    } else {
    }
    %c0 = arith.constant 0 : index
    %c0_1 = arith.constant 0 : index
    %3 = vector.load %arg3[%c0, %c0_1] : memref<16x32xf32, #tpu.memory_space<vmem>>, vector<16x32xf32>
    %c0_2 = arith.constant 0 : index
    %c0_3 = arith.constant 0 : index
    %4 = vector.load %arg4[%c0_2, %c0_3] : memref<16x32xf32, #tpu.memory_space<vmem>>, vector<16x32xf32>
    %5 = arith.truncf %3 : vector<16x32xf32> to vector<16x32xbf16>
    %6 = arith.truncf %4 : vector<16x32xf32> to vector<16x32xbf16>
    %7 = arith.addf %3, %4 : vector<16x32xf32>
    %8 = arith.truncf %7 : vector<16x32xf32> to vector<16x32xbf16>
    %c0_4 = arith.constant 0 : index
    %c0_5 = arith.constant 0 : index
    %9 = vector.load %arg5[%c0_4, %c0_5] : memref<32x96xbf16, #tpu.memory_space<vmem>>, vector<32x96xbf16>
    %cst = arith.constant dense<0.000000e+00> : vector<16x96xf32>
    %10 = tpu.matmul %5, %9, %cst {dimension_numbers = #tpu.dot_dimension_numbers<[1], [0], [0], [1], [0, 0, 1, 1], [], []>} : vector<16x32xbf16>, vector<32x96xbf16>, vector<16x96xf32> -> vector<16x96xf32>
    %c0_6 = arith.constant 0 : index
    %c0_7 = arith.constant 0 : index
    %11 = vector.load %arg6[%c0_6, %c0_7] : memref<32x96xbf16, #tpu.memory_space<vmem>>, vector<32x96xbf16>
    %cst_8 = arith.constant dense<0.000000e+00> : vector<16x96xf32>
    %12 = tpu.matmul %6, %11, %cst_8 {dimension_numbers = #tpu.dot_dimension_numbers<[1], [0], [0], [1], [0, 0, 1, 1], [], []>} : vector<16x32xbf16>, vector<32x96xbf16>, vector<16x96xf32> -> vector<16x96xf32>
    %c0_9 = arith.constant 0 : index
    %c0_10 = arith.constant 0 : index
    %13 = vector.load %arg7[%c0_9, %c0_10] : memref<32x96xbf16, #tpu.memory_space<vmem>>, vector<32x96xbf16>
    %cst_11 = arith.constant dense<0.000000e+00> : vector<16x96xf32>
    %14 = tpu.matmul %8, %13, %cst_11 {dimension_numbers = #tpu.dot_dimension_numbers<[1], [0], [0], [1], [0, 0, 1, 1], [], []>} : vector<16x32xbf16>, vector<32x96xbf16>, vector<16x96xf32> -> vector<16x96xf32>
    %c0_12 = arith.constant 0 : index
    %c0_13 = arith.constant 0 : index
    %15 = vector.load %arg12[%c0_12, %c0_13] : memref<16x96xf32, #tpu.memory_space<vmem>>, vector<16x96xf32>
    %16 = arith.subf %10, %12 : vector<16x96xf32>
    %17 = arith.addf %15, %16 : vector<16x96xf32>
    %c0_14 = arith.constant 0 : index
    %c0_15 = arith.constant 0 : index
    %18 = vector.load %arg12[%c0_14, %c0_15] : memref<16x96xf32, #tpu.memory_space<vmem>>, vector<16x96xf32>
    tpu.vector_store %arg12[%c0_14, %c0_15], %17 {strides = array<i32>} : memref<16x96xf32, #tpu.memory_space<vmem>>, vector<16x96xf32>,
    %c0_16 = arith.constant 0 : index
    %c0_17 = arith.constant 0 : index
    %19 = vector.load %arg13[%c0_16, %c0_17] : memref<16x96xf32, #tpu.memory_space<vmem>>, vector<16x96xf32>
    %20 = arith.subf %14, %10 : vector<16x96xf32>
    %21 = arith.subf %20, %12 : vector<16x96xf32>
    %22 = arith.addf %19, %21 : vector<16x96xf32>
    %c0_18 = arith.constant 0 : index
    %c0_19 = arith.constant 0 : index
    %23 = vector.load %arg13[%c0_18, %c0_19] : memref<16x96xf32, #tpu.memory_space<vmem>>, vector<16x96xf32>
    tpu.vector_store %arg13[%c0_18, %c0_19], %22 {strides = array<i32>} : memref<16x96xf32, #tpu.memory_space<vmem>>, vector<16x96xf32>,
    %c0_i32_20 = arith.constant 0 : i32
    %24 = arith.cmpi eq, %arg2, %c0_i32_20 : i32
    %25 = arith.extui %24 : i1 to i32
    %c0_i32_21 = arith.constant 0 : i32
    %26 = arith.cmpi ne, %25, %c0_i32_21 : i32
    scf.if %26 {
      %c0_22 = arith.constant 0 : index
      %c0_23 = arith.constant 0 : index
      %27 = vector.load %arg12[%c0_22, %c0_23] : memref<16x96xf32, #tpu.memory_space<vmem>>, vector<16x96xf32>
      %c0_24 = arith.constant 0 : index
      %c0_25 = arith.constant 0 : index
      %28 = vector.load %arg8[%c0_24, %c0_25] : memref<1x96xf32, #tpu.memory_space<vmem>>, vector<1x96xf32>
      %29 = vector.broadcast %28 : vector<1x96xf32> to vector<16x96xf32>
      %30 = arith.addf %27, %29 : vector<16x96xf32>
      %c0_26 = arith.constant 0 : index
      %c0_27 = arith.constant 0 : index
      %31 = vector.load %arg13[%c0_26, %c0_27] : memref<16x96xf32, #tpu.memory_space<vmem>>, vector<16x96xf32>
      %c0_28 = arith.constant 0 : index
      %c0_29 = arith.constant 0 : index
      %32 = vector.load %arg9[%c0_28, %c0_29] : memref<1x96xf32, #tpu.memory_space<vmem>>, vector<1x96xf32>
      %33 = vector.broadcast %32 : vector<1x96xf32> to vector<16x96xf32>
      %34 = arith.addf %31, %33 : vector<16x96xf32>
      %35 = arith.truncf %30 : vector<16x96xf32> to vector<16x96xbf16>
      %c0_30 = arith.constant 0 : index
      %c0_31 = arith.constant 0 : index
      %36 = vector.load %arg10[%c0_30, %c0_31] : memref<16x96xbf16, #tpu.memory_space<vmem>>, vector<16x96xbf16>
      tpu.vector_store %arg10[%c0_30, %c0_31], %35 {strides = array<i32>} : memref<16x96xbf16, #tpu.memory_space<vmem>>, vector<16x96xbf16>,
      %37 = arith.truncf %34 : vector<16x96xf32> to vector<16x96xbf16>
      %c0_32 = arith.constant 0 : index
      %c0_33 = arith.constant 0 : index
      %38 = vector.load %arg11[%c0_32, %c0_33] : memref<16x96xbf16, #tpu.memory_space<vmem>>, vector<16x96xbf16>
      tpu.vector_store %arg11[%c0_32, %c0_33], %37 {strides = array<i32>} : memref<16x96xbf16, #tpu.memory_space<vmem>>, vector<16x96xbf16>,
    } else {
    }
    return
  }
  func.func @transform_0(%arg0: i32, %arg1: i32, %arg2: i32) -> (i32, i32) {
    %c0_i32 = arith.constant 0 : i32
    return %arg0, %arg2 : i32, i32
  }
  func.func @transform_1(%arg0: i32, %arg1: i32, %arg2: i32) -> (i32, i32) {
    %c0_i32 = arith.constant 0 : i32
    return %arg0, %arg2 : i32, i32
  }
  func.func @transform_2(%arg0: i32, %arg1: i32, %arg2: i32) -> (i32, i32) {
    %c0_i32 = arith.constant 0 : i32
    return %arg2, %arg1 : i32, i32
  }
  func.func @transform_3(%arg0: i32, %arg1: i32, %arg2: i32) -> (i32, i32) {
    %c0_i32 = arith.constant 0 : i32
    return %arg2, %arg1 : i32, i32
  }
  func.func @transform_4(%arg0: i32, %arg1: i32, %arg2: i32) -> (i32, i32) {
    %c0_i32 = arith.constant 0 : i32
    return %arg2, %arg1 : i32, i32
  }
  func.func @transform_5(%arg0: i32, %arg1: i32, %arg2: i32) -> (i32, i32) {
    %c0_i32 = arith.constant 0 : i32
    %c0_i32_0 = arith.constant 0 : i32
    return %c0_i32, %arg1 : i32, i32
  }
  func.func @transform_6(%arg0: i32, %arg1: i32, %arg2: i32) -> (i32, i32) {
    %c0_i32 = arith.constant 0 : i32
    %c0_i32_0 = arith.constant 0 : i32
    return %c0_i32, %arg1 : i32, i32
  }
  func.func @transform_7(%arg0: i32, %arg1: i32, %arg2: i32) -> (i32, i32) {
    %c0_i32 = arith.constant 0 : i32
    return %arg0, %arg1 : i32, i32
  }
  func.func @transform_8(%arg0: i32, %arg1: i32, %arg2: i32) -> (i32, i32) {
    %c0_i32 = arith.constant 0 : i32
    return %arg0, %arg1 : i32, i32
  }
}

module attributes {stable_mosaic.version = 11 : i64} {
  func.func @_complex_linear_kernel(%arg0: i32, %arg1: i32, %arg2: i32, %arg3: memref<16x32xbf16, #tpu.memory_space<vmem>>, %arg4: memref<16x32xbf16, #tpu.memory_space<vmem>>, %arg5: memref<32x32xbf16, #tpu.memory_space<vmem>>, %arg6: memref<32x32xbf16, #tpu.memory_space<vmem>>, %arg7: memref<32x32xbf16, #tpu.memory_space<vmem>>, %arg8: memref<1x32xf32, #tpu.memory_space<vmem>>, %arg9: memref<1x32xf32, #tpu.memory_space<vmem>>, %arg10: memref<16x32xf32, #tpu.memory_space<vmem>>, %arg11: memref<16x32xf32, #tpu.memory_space<vmem>>, %arg12: memref<1x32xf32, #tpu.memory_space<vmem>>, %arg13: memref<1x32xf32, #tpu.memory_space<vmem>>, %arg14: memref<16x32xf32, #tpu.memory_space<vmem>>, %arg15: memref<16x32xf32, #tpu.memory_space<vmem>>) attributes {dimension_semantics = [#tpu.dimension_semantics<parallel>, #tpu.dimension_semantics<parallel>, #tpu.dimension_semantics<arbitrary>], iteration_bounds = array<i64: 1, 1, 1>, scalar_prefetch = 0 : i64, scratch_operands = 0 : i64, tpu.core_type = #tpu.core_type<tc>, window_params = [{transform_indices = @transform_0, window_bounds = array<i64: 16, 32>}, {transform_indices = @transform_1, window_bounds = array<i64: 16, 32>}, {transform_indices = @transform_2, window_bounds = array<i64: 32, 32>}, {transform_indices = @transform_3, window_bounds = array<i64: 32, 32>}, {transform_indices = @transform_4, window_bounds = array<i64: 32, 32>}, {transform_indices = @transform_5, window_bounds = array<i64: 1, 32>}, {transform_indices = @transform_6, window_bounds = array<i64: 1, 32>}, {transform_indices = @transform_7, window_bounds = array<i64: 16, 32>}, {transform_indices = @transform_8, window_bounds = array<i64: 16, 32>}, {transform_indices = @transform_9, window_bounds = array<i64: 1, 32>}, {transform_indices = @transform_10, window_bounds = array<i64: 1, 32>}, {transform_indices = @transform_11, window_bounds = array<i64: 16, 32>}, {transform_indices = @transform_12, window_bounds = array<i64: 16, 32>}]} {
    %c0_i32 = arith.constant 0 : i32
    %0 = arith.cmpi eq, %arg2, %c0_i32 : i32
    %1 = arith.extui %0 : i1 to i32
    %c0_i32_0 = arith.constant 0 : i32
    %2 = arith.cmpi ne, %1, %c0_i32_0 : i32
    scf.if %2 {
      %cst_22 = arith.constant 0.000000e+00 : f32
      %27 = vector.broadcast %cst_22 : f32 to vector<16x32xf32>
      %c0_23 = arith.constant 0 : index
      %c0_24 = arith.constant 0 : index
      %28 = vector.load %arg14[%c0_23, %c0_24] : memref<16x32xf32, #tpu.memory_space<vmem>>, vector<16x32xf32>
      tpu.vector_store %arg14[%c0_23, %c0_24], %27 {strides = array<i32>} : memref<16x32xf32, #tpu.memory_space<vmem>>, vector<16x32xf32>,
      %cst_25 = arith.constant 0.000000e+00 : f32
      %29 = vector.broadcast %cst_25 : f32 to vector<16x32xf32>
      %c0_26 = arith.constant 0 : index
      %c0_27 = arith.constant 0 : index
      %30 = vector.load %arg15[%c0_26, %c0_27] : memref<16x32xf32, #tpu.memory_space<vmem>>, vector<16x32xf32>
      tpu.vector_store %arg15[%c0_26, %c0_27], %29 {strides = array<i32>} : memref<16x32xf32, #tpu.memory_space<vmem>>, vector<16x32xf32>,
    } else {
    }
    %c0 = arith.constant 0 : index
    %c0_1 = arith.constant 0 : index
    %3 = vector.load %arg3[%c0, %c0_1] : memref<16x32xbf16, #tpu.memory_space<vmem>>, vector<16x32xbf16>
    %c0_2 = arith.constant 0 : index
    %c0_3 = arith.constant 0 : index
    %4 = vector.load %arg4[%c0_2, %c0_3] : memref<16x32xbf16, #tpu.memory_space<vmem>>, vector<16x32xbf16>
    %5 = arith.extf %3 : vector<16x32xbf16> to vector<16x32xf32>
    %6 = arith.extf %4 : vector<16x32xbf16> to vector<16x32xf32>
    %7 = arith.addf %5, %6 : vector<16x32xf32>
    %8 = arith.truncf %7 : vector<16x32xf32> to vector<16x32xbf16>
    %c0_4 = arith.constant 0 : index
    %c0_5 = arith.constant 0 : index
    %9 = vector.load %arg5[%c0_4, %c0_5] : memref<32x32xbf16, #tpu.memory_space<vmem>>, vector<32x32xbf16>
    %cst = arith.constant dense<0.000000e+00> : vector<16x32xf32>
    %10 = tpu.matmul %3, %9, %cst {dimension_numbers = #tpu.dot_dimension_numbers<[1], [0], [0], [1], [0, 0, 1, 1], [], []>} : vector<16x32xbf16>, vector<32x32xbf16>, vector<16x32xf32> -> vector<16x32xf32>
    %c0_6 = arith.constant 0 : index
    %c0_7 = arith.constant 0 : index
    %11 = vector.load %arg6[%c0_6, %c0_7] : memref<32x32xbf16, #tpu.memory_space<vmem>>, vector<32x32xbf16>
    %cst_8 = arith.constant dense<0.000000e+00> : vector<16x32xf32>
    %12 = tpu.matmul %4, %11, %cst_8 {dimension_numbers = #tpu.dot_dimension_numbers<[1], [0], [0], [1], [0, 0, 1, 1], [], []>} : vector<16x32xbf16>, vector<32x32xbf16>, vector<16x32xf32> -> vector<16x32xf32>
    %c0_9 = arith.constant 0 : index
    %c0_10 = arith.constant 0 : index
    %13 = vector.load %arg7[%c0_9, %c0_10] : memref<32x32xbf16, #tpu.memory_space<vmem>>, vector<32x32xbf16>
    %cst_11 = arith.constant dense<0.000000e+00> : vector<16x32xf32>
    %14 = tpu.matmul %8, %13, %cst_11 {dimension_numbers = #tpu.dot_dimension_numbers<[1], [0], [0], [1], [0, 0, 1, 1], [], []>} : vector<16x32xbf16>, vector<32x32xbf16>, vector<16x32xf32> -> vector<16x32xf32>
    %c0_12 = arith.constant 0 : index
    %c0_13 = arith.constant 0 : index
    %15 = vector.load %arg14[%c0_12, %c0_13] : memref<16x32xf32, #tpu.memory_space<vmem>>, vector<16x32xf32>
    %16 = arith.subf %10, %12 : vector<16x32xf32>
    %17 = arith.addf %15, %16 : vector<16x32xf32>
    %c0_14 = arith.constant 0 : index
    %c0_15 = arith.constant 0 : index
    %18 = vector.load %arg14[%c0_14, %c0_15] : memref<16x32xf32, #tpu.memory_space<vmem>>, vector<16x32xf32>
    tpu.vector_store %arg14[%c0_14, %c0_15], %17 {strides = array<i32>} : memref<16x32xf32, #tpu.memory_space<vmem>>, vector<16x32xf32>,
    %c0_16 = arith.constant 0 : index
    %c0_17 = arith.constant 0 : index
    %19 = vector.load %arg15[%c0_16, %c0_17] : memref<16x32xf32, #tpu.memory_space<vmem>>, vector<16x32xf32>
    %20 = arith.subf %14, %10 : vector<16x32xf32>
    %21 = arith.subf %20, %12 : vector<16x32xf32>
    %22 = arith.addf %19, %21 : vector<16x32xf32>
    %c0_18 = arith.constant 0 : index
    %c0_19 = arith.constant 0 : index
    %23 = vector.load %arg15[%c0_18, %c0_19] : memref<16x32xf32, #tpu.memory_space<vmem>>, vector<16x32xf32>
    tpu.vector_store %arg15[%c0_18, %c0_19], %22 {strides = array<i32>} : memref<16x32xf32, #tpu.memory_space<vmem>>, vector<16x32xf32>,
    %c0_i32_20 = arith.constant 0 : i32
    %24 = arith.cmpi eq, %arg2, %c0_i32_20 : i32
    %25 = arith.extui %24 : i1 to i32
    %c0_i32_21 = arith.constant 0 : i32
    %26 = arith.cmpi ne, %25, %c0_i32_21 : i32
    scf.if %26 {
      %c0_22 = arith.constant 0 : index
      %c0_23 = arith.constant 0 : index
      %27 = vector.load %arg14[%c0_22, %c0_23] : memref<16x32xf32, #tpu.memory_space<vmem>>, vector<16x32xf32>
      %c0_24 = arith.constant 0 : index
      %c0_25 = arith.constant 0 : index
      %28 = vector.load %arg8[%c0_24, %c0_25] : memref<1x32xf32, #tpu.memory_space<vmem>>, vector<1x32xf32>
      %29 = vector.broadcast %28 : vector<1x32xf32> to vector<16x32xf32>
      %30 = arith.addf %27, %29 : vector<16x32xf32>
      %c0_26 = arith.constant 0 : index
      %c0_27 = arith.constant 0 : index
      %31 = vector.load %arg15[%c0_26, %c0_27] : memref<16x32xf32, #tpu.memory_space<vmem>>, vector<16x32xf32>
      %c0_28 = arith.constant 0 : index
      %c0_29 = arith.constant 0 : index
      %32 = vector.load %arg9[%c0_28, %c0_29] : memref<1x32xf32, #tpu.memory_space<vmem>>, vector<1x32xf32>
      %33 = vector.broadcast %32 : vector<1x32xf32> to vector<16x32xf32>
      %34 = arith.addf %31, %33 : vector<16x32xf32>
      %c0_30 = arith.constant 0 : index
      %c0_31 = arith.constant 0 : index
      %35 = vector.load %arg12[%c0_30, %c0_31] : memref<1x32xf32, #tpu.memory_space<vmem>>, vector<1x32xf32>
      %c0_32 = arith.constant 0 : index
      %c0_33 = arith.constant 0 : index
      %36 = vector.load %arg13[%c0_32, %c0_33] : memref<1x32xf32, #tpu.memory_space<vmem>>, vector<1x32xf32>
      %c0_34 = arith.constant 0 : index
      %c0_35 = arith.constant 0 : index
      %37 = vector.load %arg10[%c0_34, %c0_35] : memref<16x32xf32, #tpu.memory_space<vmem>>, vector<16x32xf32>
      %38 = arith.addf %30, %37 : vector<16x32xf32>
      %cst_36 = arith.constant dense<0.000000e+00> : vector<16xf32>
      %39 = vector.multi_reduction <add>, %38, %cst_36 [1] : vector<16x32xf32> to vector<16xf32>
      %40 = vector.shape_cast %39 : vector<16xf32> to vector<16x1xf32>
      %cst_37 = arith.constant 3.200000e+01 : f32
      %41 = vector.broadcast %cst_37 : f32 to vector<16x1xf32>
      %42 = arith.divf %40, %41 : vector<16x1xf32>
      %43 = vector.broadcast %42 : vector<16x1xf32> to vector<16x32xf32>
      %44 = arith.subf %38, %43 : vector<16x32xf32>
      %45 = arith.mulf %44, %44 : vector<16x32xf32>
      %cst_38 = arith.constant dense<0.000000e+00> : vector<16xf32>
      %46 = vector.multi_reduction <add>, %45, %cst_38 [1] : vector<16x32xf32> to vector<16xf32>
      %47 = vector.shape_cast %46 : vector<16xf32> to vector<16x1xf32>
      %cst_39 = arith.constant 3.200000e+01 : f32
      %48 = vector.broadcast %cst_39 : f32 to vector<16x1xf32>
      %49 = arith.divf %47, %48 : vector<16x1xf32>
      %50 = vector.broadcast %42 : vector<16x1xf32> to vector<16x32xf32>
      %51 = arith.subf %38, %50 : vector<16x32xf32>
      %cst_40 = arith.constant 9.99999974E-6 : f32
      %52 = vector.broadcast %cst_40 : f32 to vector<16x1xf32>
      %53 = arith.addf %49, %52 : vector<16x1xf32>
      %54 = math.rsqrt %53 : vector<16x1xf32>
      %55 = vector.broadcast %54 : vector<16x1xf32> to vector<16x32xf32>
      %56 = arith.mulf %51, %55 : vector<16x32xf32>
      %57 = vector.broadcast %35 : vector<1x32xf32> to vector<16x32xf32>
      %58 = arith.mulf %56, %57 : vector<16x32xf32>
      %59 = vector.broadcast %36 : vector<1x32xf32> to vector<16x32xf32>
      %60 = arith.addf %58, %59 : vector<16x32xf32>
      %c0_41 = arith.constant 0 : index
      %c0_42 = arith.constant 0 : index
      %61 = vector.load %arg11[%c0_41, %c0_42] : memref<16x32xf32, #tpu.memory_space<vmem>>, vector<16x32xf32>
      %62 = arith.addf %34, %61 : vector<16x32xf32>
      %cst_43 = arith.constant dense<0.000000e+00> : vector<16xf32>
      %63 = vector.multi_reduction <add>, %62, %cst_43 [1] : vector<16x32xf32> to vector<16xf32>
      %64 = vector.shape_cast %63 : vector<16xf32> to vector<16x1xf32>
      %cst_44 = arith.constant 3.200000e+01 : f32
      %65 = vector.broadcast %cst_44 : f32 to vector<16x1xf32>
      %66 = arith.divf %64, %65 : vector<16x1xf32>
      %67 = vector.broadcast %66 : vector<16x1xf32> to vector<16x32xf32>
      %68 = arith.subf %62, %67 : vector<16x32xf32>
      %69 = arith.mulf %68, %68 : vector<16x32xf32>
      %cst_45 = arith.constant dense<0.000000e+00> : vector<16xf32>
      %70 = vector.multi_reduction <add>, %69, %cst_45 [1] : vector<16x32xf32> to vector<16xf32>
      %71 = vector.shape_cast %70 : vector<16xf32> to vector<16x1xf32>
      %cst_46 = arith.constant 3.200000e+01 : f32
      %72 = vector.broadcast %cst_46 : f32 to vector<16x1xf32>
      %73 = arith.divf %71, %72 : vector<16x1xf32>
      %74 = vector.broadcast %66 : vector<16x1xf32> to vector<16x32xf32>
      %75 = arith.subf %62, %74 : vector<16x32xf32>
      %cst_47 = arith.constant 9.99999974E-6 : f32
      %76 = vector.broadcast %cst_47 : f32 to vector<16x1xf32>
      %77 = arith.addf %73, %76 : vector<16x1xf32>
      %78 = math.rsqrt %77 : vector<16x1xf32>
      %79 = vector.broadcast %78 : vector<16x1xf32> to vector<16x32xf32>
      %80 = arith.mulf %75, %79 : vector<16x32xf32>
      %81 = vector.broadcast %35 : vector<1x32xf32> to vector<16x32xf32>
      %82 = arith.mulf %80, %81 : vector<16x32xf32>
      %83 = vector.broadcast %36 : vector<1x32xf32> to vector<16x32xf32>
      %84 = arith.addf %82, %83 : vector<16x32xf32>
      %c0_48 = arith.constant 0 : index
      %c0_49 = arith.constant 0 : index
      %85 = vector.load %arg14[%c0_48, %c0_49] : memref<16x32xf32, #tpu.memory_space<vmem>>, vector<16x32xf32>
      tpu.vector_store %arg14[%c0_48, %c0_49], %60 {strides = array<i32>} : memref<16x32xf32, #tpu.memory_space<vmem>>, vector<16x32xf32>,
      %c0_50 = arith.constant 0 : index
      %c0_51 = arith.constant 0 : index
      %86 = vector.load %arg15[%c0_50, %c0_51] : memref<16x32xf32, #tpu.memory_space<vmem>>, vector<16x32xf32>
      tpu.vector_store %arg15[%c0_50, %c0_51], %84 {strides = array<i32>} : memref<16x32xf32, #tpu.memory_space<vmem>>, vector<16x32xf32>,
    } else {
    }
    return
  }
  func.func @transform_0(%arg0: i32, %arg1: i32, %arg2: i32) -> (i32, i32) {
    %c0_i32 = arith.constant 0 : i32
    return %arg0, %arg2 : i32, i32
  }
  func.func @transform_1(%arg0: i32, %arg1: i32, %arg2: i32) -> (i32, i32) {
    %c0_i32 = arith.constant 0 : i32
    return %arg0, %arg2 : i32, i32
  }
  func.func @transform_2(%arg0: i32, %arg1: i32, %arg2: i32) -> (i32, i32) {
    %c0_i32 = arith.constant 0 : i32
    return %arg2, %arg1 : i32, i32
  }
  func.func @transform_3(%arg0: i32, %arg1: i32, %arg2: i32) -> (i32, i32) {
    %c0_i32 = arith.constant 0 : i32
    return %arg2, %arg1 : i32, i32
  }
  func.func @transform_4(%arg0: i32, %arg1: i32, %arg2: i32) -> (i32, i32) {
    %c0_i32 = arith.constant 0 : i32
    return %arg2, %arg1 : i32, i32
  }
  func.func @transform_5(%arg0: i32, %arg1: i32, %arg2: i32) -> (i32, i32) {
    %c0_i32 = arith.constant 0 : i32
    %c0_i32_0 = arith.constant 0 : i32
    return %c0_i32, %arg1 : i32, i32
  }
  func.func @transform_6(%arg0: i32, %arg1: i32, %arg2: i32) -> (i32, i32) {
    %c0_i32 = arith.constant 0 : i32
    %c0_i32_0 = arith.constant 0 : i32
    return %c0_i32, %arg1 : i32, i32
  }
  func.func @transform_7(%arg0: i32, %arg1: i32, %arg2: i32) -> (i32, i32) {
    %c0_i32 = arith.constant 0 : i32
    return %arg0, %arg1 : i32, i32
  }
  func.func @transform_8(%arg0: i32, %arg1: i32, %arg2: i32) -> (i32, i32) {
    %c0_i32 = arith.constant 0 : i32
    return %arg0, %arg1 : i32, i32
  }
  func.func @transform_9(%arg0: i32, %arg1: i32, %arg2: i32) -> (i32, i32) {
    %c0_i32 = arith.constant 0 : i32
    %c0_i32_0 = arith.constant 0 : i32
    return %c0_i32, %arg1 : i32, i32
  }
  func.func @transform_10(%arg0: i32, %arg1: i32, %arg2: i32) -> (i32, i32) {
    %c0_i32 = arith.constant 0 : i32
    %c0_i32_0 = arith.constant 0 : i32
    return %c0_i32, %arg1 : i32, i32
  }
  func.func @transform_11(%arg0: i32, %arg1: i32, %arg2: i32) -> (i32, i32) {
    %c0_i32 = arith.constant 0 : i32
    return %arg0, %arg1 : i32, i32
  }
  func.func @transform_12(%arg0: i32, %arg1: i32, %arg2: i32) -> (i32, i32) {
    %c0_i32 = arith.constant 0 : i32
    return %arg0, %arg1 : i32, i32
  }
}

module attributes {stable_mosaic.version = 11 : i64} {
  func.func @_complex_linear_kernel(%arg0: i32, %arg1: i32, %arg2: i32, %arg3: memref<16x32xf32, #tpu.memory_space<vmem>>, %arg4: memref<16x32xf32, #tpu.memory_space<vmem>>, %arg5: memref<32x64xbf16, #tpu.memory_space<vmem>>, %arg6: memref<32x64xbf16, #tpu.memory_space<vmem>>, %arg7: memref<32x64xbf16, #tpu.memory_space<vmem>>, %arg8: memref<1x64xf32, #tpu.memory_space<vmem>>, %arg9: memref<1x64xf32, #tpu.memory_space<vmem>>, %arg10: memref<16x64xbf16, #tpu.memory_space<vmem>>, %arg11: memref<16x64xbf16, #tpu.memory_space<vmem>>, %arg12: memref<16x64xf32, #tpu.memory_space<vmem>>, %arg13: memref<16x64xf32, #tpu.memory_space<vmem>>) attributes {dimension_semantics = [#tpu.dimension_semantics<parallel>, #tpu.dimension_semantics<parallel>, #tpu.dimension_semantics<arbitrary>], iteration_bounds = array<i64: 1, 1, 1>, scalar_prefetch = 0 : i64, scratch_operands = 2 : i64, tpu.core_type = #tpu.core_type<tc>, window_params = [{transform_indices = @transform_0, window_bounds = array<i64: 16, 32>}, {transform_indices = @transform_1, window_bounds = array<i64: 16, 32>}, {transform_indices = @transform_2, window_bounds = array<i64: 32, 64>}, {transform_indices = @transform_3, window_bounds = array<i64: 32, 64>}, {transform_indices = @transform_4, window_bounds = array<i64: 32, 64>}, {transform_indices = @transform_5, window_bounds = array<i64: 1, 64>}, {transform_indices = @transform_6, window_bounds = array<i64: 1, 64>}, {transform_indices = @transform_7, window_bounds = array<i64: 16, 64>}, {transform_indices = @transform_8, window_bounds = array<i64: 16, 64>}]} {
    %c0_i32 = arith.constant 0 : i32
    %0 = arith.cmpi eq, %arg2, %c0_i32 : i32
    %1 = arith.extui %0 : i1 to i32
    %c0_i32_0 = arith.constant 0 : i32
    %2 = arith.cmpi ne, %1, %c0_i32_0 : i32
    scf.if %2 {
      %cst_22 = arith.constant 0.000000e+00 : f32
      %27 = vector.broadcast %cst_22 : f32 to vector<16x64xf32>
      %c0_23 = arith.constant 0 : index
      %c0_24 = arith.constant 0 : index
      %28 = vector.load %arg12[%c0_23, %c0_24] : memref<16x64xf32, #tpu.memory_space<vmem>>, vector<16x64xf32>
      tpu.vector_store %arg12[%c0_23, %c0_24], %27 {strides = array<i32>} : memref<16x64xf32, #tpu.memory_space<vmem>>, vector<16x64xf32>,
      %cst_25 = arith.constant 0.000000e+00 : f32
      %29 = vector.broadcast %cst_25 : f32 to vector<16x64xf32>
      %c0_26 = arith.constant 0 : index
      %c0_27 = arith.constant 0 : index
      %30 = vector.load %arg13[%c0_26, %c0_27] : memref<16x64xf32, #tpu.memory_space<vmem>>, vector<16x64xf32>
      tpu.vector_store %arg13[%c0_26, %c0_27], %29 {strides = array<i32>} : memref<16x64xf32, #tpu.memory_space<vmem>>, vector<16x64xf32>,
    } else {
    }
    %c0 = arith.constant 0 : index
    %c0_1 = arith.constant 0 : index
    %3 = vector.load %arg3[%c0, %c0_1] : memref<16x32xf32, #tpu.memory_space<vmem>>, vector<16x32xf32>
    %c0_2 = arith.constant 0 : index
    %c0_3 = arith.constant 0 : index
    %4 = vector.load %arg4[%c0_2, %c0_3] : memref<16x32xf32, #tpu.memory_space<vmem>>, vector<16x32xf32>
    %5 = arith.truncf %3 : vector<16x32xf32> to vector<16x32xbf16>
    %6 = arith.truncf %4 : vector<16x32xf32> to vector<16x32xbf16>
    %7 = arith.addf %3, %4 : vector<16x32xf32>
    %8 = arith.truncf %7 : vector<16x32xf32> to vector<16x32xbf16>
    %c0_4 = arith.constant 0 : index
    %c0_5 = arith.constant 0 : index
    %9 = vector.load %arg5[%c0_4, %c0_5] : memref<32x64xbf16, #tpu.memory_space<vmem>>, vector<32x64xbf16>
    %cst = arith.constant dense<0.000000e+00> : vector<16x64xf32>
    %10 = tpu.matmul %5, %9, %cst {dimension_numbers = #tpu.dot_dimension_numbers<[1], [0], [0], [1], [0, 0, 1, 1], [], []>} : vector<16x32xbf16>, vector<32x64xbf16>, vector<16x64xf32> -> vector<16x64xf32>
    %c0_6 = arith.constant 0 : index
    %c0_7 = arith.constant 0 : index
    %11 = vector.load %arg6[%c0_6, %c0_7] : memref<32x64xbf16, #tpu.memory_space<vmem>>, vector<32x64xbf16>
    %cst_8 = arith.constant dense<0.000000e+00> : vector<16x64xf32>
    %12 = tpu.matmul %6, %11, %cst_8 {dimension_numbers = #tpu.dot_dimension_numbers<[1], [0], [0], [1], [0, 0, 1, 1], [], []>} : vector<16x32xbf16>, vector<32x64xbf16>, vector<16x64xf32> -> vector<16x64xf32>
    %c0_9 = arith.constant 0 : index
    %c0_10 = arith.constant 0 : index
    %13 = vector.load %arg7[%c0_9, %c0_10] : memref<32x64xbf16, #tpu.memory_space<vmem>>, vector<32x64xbf16>
    %cst_11 = arith.constant dense<0.000000e+00> : vector<16x64xf32>
    %14 = tpu.matmul %8, %13, %cst_11 {dimension_numbers = #tpu.dot_dimension_numbers<[1], [0], [0], [1], [0, 0, 1, 1], [], []>} : vector<16x32xbf16>, vector<32x64xbf16>, vector<16x64xf32> -> vector<16x64xf32>
    %c0_12 = arith.constant 0 : index
    %c0_13 = arith.constant 0 : index
    %15 = vector.load %arg12[%c0_12, %c0_13] : memref<16x64xf32, #tpu.memory_space<vmem>>, vector<16x64xf32>
    %16 = arith.subf %10, %12 : vector<16x64xf32>
    %17 = arith.addf %15, %16 : vector<16x64xf32>
    %c0_14 = arith.constant 0 : index
    %c0_15 = arith.constant 0 : index
    %18 = vector.load %arg12[%c0_14, %c0_15] : memref<16x64xf32, #tpu.memory_space<vmem>>, vector<16x64xf32>
    tpu.vector_store %arg12[%c0_14, %c0_15], %17 {strides = array<i32>} : memref<16x64xf32, #tpu.memory_space<vmem>>, vector<16x64xf32>,
    %c0_16 = arith.constant 0 : index
    %c0_17 = arith.constant 0 : index
    %19 = vector.load %arg13[%c0_16, %c0_17] : memref<16x64xf32, #tpu.memory_space<vmem>>, vector<16x64xf32>
    %20 = arith.subf %14, %10 : vector<16x64xf32>
    %21 = arith.subf %20, %12 : vector<16x64xf32>
    %22 = arith.addf %19, %21 : vector<16x64xf32>
    %c0_18 = arith.constant 0 : index
    %c0_19 = arith.constant 0 : index
    %23 = vector.load %arg13[%c0_18, %c0_19] : memref<16x64xf32, #tpu.memory_space<vmem>>, vector<16x64xf32>
    tpu.vector_store %arg13[%c0_18, %c0_19], %22 {strides = array<i32>} : memref<16x64xf32, #tpu.memory_space<vmem>>, vector<16x64xf32>,
    %c0_i32_20 = arith.constant 0 : i32
    %24 = arith.cmpi eq, %arg2, %c0_i32_20 : i32
    %25 = arith.extui %24 : i1 to i32
    %c0_i32_21 = arith.constant 0 : i32
    %26 = arith.cmpi ne, %25, %c0_i32_21 : i32
    scf.if %26 {
      %c0_22 = arith.constant 0 : index
      %c0_23 = arith.constant 0 : index
      %27 = vector.load %arg12[%c0_22, %c0_23] : memref<16x64xf32, #tpu.memory_space<vmem>>, vector<16x64xf32>
      %c0_24 = arith.constant 0 : index
      %c0_25 = arith.constant 0 : index
      %28 = vector.load %arg8[%c0_24, %c0_25] : memref<1x64xf32, #tpu.memory_space<vmem>>, vector<1x64xf32>
      %29 = vector.broadcast %28 : vector<1x64xf32> to vector<16x64xf32>
      %30 = arith.addf %27, %29 : vector<16x64xf32>
      %c0_26 = arith.constant 0 : index
      %c0_27 = arith.constant 0 : index
      %31 = vector.load %arg13[%c0_26, %c0_27] : memref<16x64xf32, #tpu.memory_space<vmem>>, vector<16x64xf32>
      %c0_28 = arith.constant 0 : index
      %c0_29 = arith.constant 0 : index
      %32 = vector.load %arg9[%c0_28, %c0_29] : memref<1x64xf32, #tpu.memory_space<vmem>>, vector<1x64xf32>
      %33 = vector.broadcast %32 : vector<1x64xf32> to vector<16x64xf32>
      %34 = arith.addf %31, %33 : vector<16x64xf32>
      %cst_30 = arith.constant 0.000000e+00 : f32
      %35 = vector.broadcast %cst_30 : f32 to vector<16x64xf32>
      %36 = arith.maximumf %30, %35 : vector<16x64xf32>
      %cst_31 = arith.constant 0.000000e+00 : f32
      %37 = vector.broadcast %cst_31 : f32 to vector<16x64xf32>
      %38 = arith.maximumf %34, %37 : vector<16x64xf32>
      %39 = arith.truncf %36 : vector<16x64xf32> to vector<16x64xbf16>
      %c0_32 = arith.constant 0 : index
      %c0_33 = arith.constant 0 : index
      %40 = vector.load %arg10[%c0_32, %c0_33] : memref<16x64xbf16, #tpu.memory_space<vmem>>, vector<16x64xbf16>
      tpu.vector_store %arg10[%c0_32, %c0_33], %39 {strides = array<i32>} : memref<16x64xbf16, #tpu.memory_space<vmem>>, vector<16x64xbf16>,
      %41 = arith.truncf %38 : vector<16x64xf32> to vector<16x64xbf16>
      %c0_34 = arith.constant 0 : index
      %c0_35 = arith.constant 0 : index
      %42 = vector.load %arg11[%c0_34, %c0_35] : memref<16x64xbf16, #tpu.memory_space<vmem>>, vector<16x64xbf16>
      tpu.vector_store %arg11[%c0_34, %c0_35], %41 {strides = array<i32>} : memref<16x64xbf16, #tpu.memory_space<vmem>>, vector<16x64xbf16>,
    } else {
    }
    return
  }
  func.func @transform_0(%arg0: i32, %arg1: i32, %arg2: i32) -> (i32, i32) {
    %c0_i32 = arith.constant 0 : i32
    return %arg0, %arg2 : i32, i32
  }
  func.func @transform_1(%arg0: i32, %arg1: i32, %arg2: i32) -> (i32, i32) {
    %c0_i32 = arith.constant 0 : i32
    return %arg0, %arg2 : i32, i32
  }
  func.func @transform_2(%arg0: i32, %arg1: i32, %arg2: i32) -> (i32, i32) {
    %c0_i32 = arith.constant 0 : i32
    return %arg2, %arg1 : i32, i32
  }
  func.func @transform_3(%arg0: i32, %arg1: i32, %arg2: i32) -> (i32, i32) {
    %c0_i32 = arith.constant 0 : i32
    return %arg2, %arg1 : i32, i32
  }
  func.func @transform_4(%arg0: i32, %arg1: i32, %arg2: i32) -> (i32, i32) {
    %c0_i32 = arith.constant 0 : i32
    return %arg2, %arg1 : i32, i32
  }
  func.func @transform_5(%arg0: i32, %arg1: i32, %arg2: i32) -> (i32, i32) {
    %c0_i32 = arith.constant 0 : i32
    %c0_i32_0 = arith.constant 0 : i32
    return %c0_i32, %arg1 : i32, i32
  }
  func.func @transform_6(%arg0: i32, %arg1: i32, %arg2: i32) -> (i32, i32) {
    %c0_i32 = arith.constant 0 : i32
    %c0_i32_0 = arith.constant 0 : i32
    return %c0_i32, %arg1 : i32, i32
  }
  func.func @transform_7(%arg0: i32, %arg1: i32, %arg2: i32) -> (i32, i32) {
    %c0_i32 = arith.constant 0 : i32
    return %arg0, %arg1 : i32, i32
  }
  func.func @transform_8(%arg0: i32, %arg1: i32, %arg2: i32) -> (i32, i32) {
    %c0_i32 = arith.constant 0 : i32
    return %arg0, %arg1 : i32, i32
  }
}

module attributes {stable_mosaic.version = 11 : i64} {
  func.func @_complex_linear_kernel(%arg0: i32, %arg1: i32, %arg2: i32, %arg3: memref<16x64xbf16, #tpu.memory_space<vmem>>, %arg4: memref<16x64xbf16, #tpu.memory_space<vmem>>, %arg5: memref<64x32xbf16, #tpu.memory_space<vmem>>, %arg6: memref<64x32xbf16, #tpu.memory_space<vmem>>, %arg7: memref<64x32xbf16, #tpu.memory_space<vmem>>, %arg8: memref<1x32xf32, #tpu.memory_space<vmem>>, %arg9: memref<1x32xf32, #tpu.memory_space<vmem>>, %arg10: memref<16x32xf32, #tpu.memory_space<vmem>>, %arg11: memref<16x32xf32, #tpu.memory_space<vmem>>, %arg12: memref<1x32xf32, #tpu.memory_space<vmem>>, %arg13: memref<1x32xf32, #tpu.memory_space<vmem>>, %arg14: memref<16x32xf32, #tpu.memory_space<vmem>>, %arg15: memref<16x32xf32, #tpu.memory_space<vmem>>) attributes {dimension_semantics = [#tpu.dimension_semantics<parallel>, #tpu.dimension_semantics<parallel>, #tpu.dimension_semantics<arbitrary>], iteration_bounds = array<i64: 1, 1, 1>, scalar_prefetch = 0 : i64, scratch_operands = 0 : i64, tpu.core_type = #tpu.core_type<tc>, window_params = [{transform_indices = @transform_0, window_bounds = array<i64: 16, 64>}, {transform_indices = @transform_1, window_bounds = array<i64: 16, 64>}, {transform_indices = @transform_2, window_bounds = array<i64: 64, 32>}, {transform_indices = @transform_3, window_bounds = array<i64: 64, 32>}, {transform_indices = @transform_4, window_bounds = array<i64: 64, 32>}, {transform_indices = @transform_5, window_bounds = array<i64: 1, 32>}, {transform_indices = @transform_6, window_bounds = array<i64: 1, 32>}, {transform_indices = @transform_7, window_bounds = array<i64: 16, 32>}, {transform_indices = @transform_8, window_bounds = array<i64: 16, 32>}, {transform_indices = @transform_9, window_bounds = array<i64: 1, 32>}, {transform_indices = @transform_10, window_bounds = array<i64: 1, 32>}, {transform_indices = @transform_11, window_bounds = array<i64: 16, 32>}, {transform_indices = @transform_12, window_bounds = array<i64: 16, 32>}]} {
    %c0_i32 = arith.constant 0 : i32
    %0 = arith.cmpi eq, %arg2, %c0_i32 : i32
    %1 = arith.extui %0 : i1 to i32
    %c0_i32_0 = arith.constant 0 : i32
    %2 = arith.cmpi ne, %1, %c0_i32_0 : i32
    scf.if %2 {
      %cst_22 = arith.constant 0.000000e+00 : f32
      %27 = vector.broadcast %cst_22 : f32 to vector<16x32xf32>
      %c0_23 = arith.constant 0 : index
      %c0_24 = arith.constant 0 : index
      %28 = vector.load %arg14[%c0_23, %c0_24] : memref<16x32xf32, #tpu.memory_space<vmem>>, vector<16x32xf32>
      tpu.vector_store %arg14[%c0_23, %c0_24], %27 {strides = array<i32>} : memref<16x32xf32, #tpu.memory_space<vmem>>, vector<16x32xf32>,
      %cst_25 = arith.constant 0.000000e+00 : f32
      %29 = vector.broadcast %cst_25 : f32 to vector<16x32xf32>
      %c0_26 = arith.constant 0 : index
      %c0_27 = arith.constant 0 : index
      %30 = vector.load %arg15[%c0_26, %c0_27] : memref<16x32xf32, #tpu.memory_space<vmem>>, vector<16x32xf32>
      tpu.vector_store %arg15[%c0_26, %c0_27], %29 {strides = array<i32>} : memref<16x32xf32, #tpu.memory_space<vmem>>, vector<16x32xf32>,
    } else {
    }
    %c0 = arith.constant 0 : index
    %c0_1 = arith.constant 0 : index
    %3 = vector.load %arg3[%c0, %c0_1] : memref<16x64xbf16, #tpu.memory_space<vmem>>, vector<16x64xbf16>
    %c0_2 = arith.constant 0 : index
    %c0_3 = arith.constant 0 : index
    %4 = vector.load %arg4[%c0_2, %c0_3] : memref<16x64xbf16, #tpu.memory_space<vmem>>, vector<16x64xbf16>
    %5 = arith.extf %3 : vector<16x64xbf16> to vector<16x64xf32>
    %6 = arith.extf %4 : vector<16x64xbf16> to vector<16x64xf32>
    %7 = arith.addf %5, %6 : vector<16x64xf32>
    %8 = arith.truncf %7 : vector<16x64xf32> to vector<16x64xbf16>
    %c0_4 = arith.constant 0 : index
    %c0_5 = arith.constant 0 : index
    %9 = vector.load %arg5[%c0_4, %c0_5] : memref<64x32xbf16, #tpu.memory_space<vmem>>, vector<64x32xbf16>
    %cst = arith.constant dense<0.000000e+00> : vector<16x32xf32>
    %10 = tpu.matmul %3, %9, %cst {dimension_numbers = #tpu.dot_dimension_numbers<[1], [0], [0], [1], [0, 0, 1, 1], [], []>} : vector<16x64xbf16>, vector<64x32xbf16>, vector<16x32xf32> -> vector<16x32xf32>
    %c0_6 = arith.constant 0 : index
    %c0_7 = arith.constant 0 : index
    %11 = vector.load %arg6[%c0_6, %c0_7] : memref<64x32xbf16, #tpu.memory_space<vmem>>, vector<64x32xbf16>
    %cst_8 = arith.constant dense<0.000000e+00> : vector<16x32xf32>
    %12 = tpu.matmul %4, %11, %cst_8 {dimension_numbers = #tpu.dot_dimension_numbers<[1], [0], [0], [1], [0, 0, 1, 1], [], []>} : vector<16x64xbf16>, vector<64x32xbf16>, vector<16x32xf32> -> vector<16x32xf32>
    %c0_9 = arith.constant 0 : index
    %c0_10 = arith.constant 0 : index
    %13 = vector.load %arg7[%c0_9, %c0_10] : memref<64x32xbf16, #tpu.memory_space<vmem>>, vector<64x32xbf16>
    %cst_11 = arith.constant dense<0.000000e+00> : vector<16x32xf32>
    %14 = tpu.matmul %8, %13, %cst_11 {dimension_numbers = #tpu.dot_dimension_numbers<[1], [0], [0], [1], [0, 0, 1, 1], [], []>} : vector<16x64xbf16>, vector<64x32xbf16>, vector<16x32xf32> -> vector<16x32xf32>
    %c0_12 = arith.constant 0 : index
    %c0_13 = arith.constant 0 : index
    %15 = vector.load %arg14[%c0_12, %c0_13] : memref<16x32xf32, #tpu.memory_space<vmem>>, vector<16x32xf32>
    %16 = arith.subf %10, %12 : vector<16x32xf32>
    %17 = arith.addf %15, %16 : vector<16x32xf32>
    %c0_14 = arith.constant 0 : index
    %c0_15 = arith.constant 0 : index
    %18 = vector.load %arg14[%c0_14, %c0_15] : memref<16x32xf32, #tpu.memory_space<vmem>>, vector<16x32xf32>
    tpu.vector_store %arg14[%c0_14, %c0_15], %17 {strides = array<i32>} : memref<16x32xf32, #tpu.memory_space<vmem>>, vector<16x32xf32>,
    %c0_16 = arith.constant 0 : index
    %c0_17 = arith.constant 0 : index
    %19 = vector.load %arg15[%c0_16, %c0_17] : memref<16x32xf32, #tpu.memory_space<vmem>>, vector<16x32xf32>
    %20 = arith.subf %14, %10 : vector<16x32xf32>
    %21 = arith.subf %20, %12 : vector<16x32xf32>
    %22 = arith.addf %19, %21 : vector<16x32xf32>
    %c0_18 = arith.constant 0 : index
    %c0_19 = arith.constant 0 : index
    %23 = vector.load %arg15[%c0_18, %c0_19] : memref<16x32xf32, #tpu.memory_space<vmem>>, vector<16x32xf32>
    tpu.vector_store %arg15[%c0_18, %c0_19], %22 {strides = array<i32>} : memref<16x32xf32, #tpu.memory_space<vmem>>, vector<16x32xf32>,
    %c0_i32_20 = arith.constant 0 : i32
    %24 = arith.cmpi eq, %arg2, %c0_i32_20 : i32
    %25 = arith.extui %24 : i1 to i32
    %c0_i32_21 = arith.constant 0 : i32
    %26 = arith.cmpi ne, %25, %c0_i32_21 : i32
    scf.if %26 {
      %c0_22 = arith.constant 0 : index
      %c0_23 = arith.constant 0 : index
      %27 = vector.load %arg14[%c0_22, %c0_23] : memref<16x32xf32, #tpu.memory_space<vmem>>, vector<16x32xf32>
      %c0_24 = arith.constant 0 : index
      %c0_25 = arith.constant 0 : index
      %28 = vector.load %arg8[%c0_24, %c0_25] : memref<1x32xf32, #tpu.memory_space<vmem>>, vector<1x32xf32>
      %29 = vector.broadcast %28 : vector<1x32xf32> to vector<16x32xf32>
      %30 = arith.addf %27, %29 : vector<16x32xf32>
      %c0_26 = arith.constant 0 : index
      %c0_27 = arith.constant 0 : index
      %31 = vector.load %arg15[%c0_26, %c0_27] : memref<16x32xf32, #tpu.memory_space<vmem>>, vector<16x32xf32>
      %c0_28 = arith.constant 0 : index
      %c0_29 = arith.constant 0 : index
      %32 = vector.load %arg9[%c0_28, %c0_29] : memref<1x32xf32, #tpu.memory_space<vmem>>, vector<1x32xf32>
      %33 = vector.broadcast %32 : vector<1x32xf32> to vector<16x32xf32>
      %34 = arith.addf %31, %33 : vector<16x32xf32>
      %c0_30 = arith.constant 0 : index
      %c0_31 = arith.constant 0 : index
      %35 = vector.load %arg12[%c0_30, %c0_31] : memref<1x32xf32, #tpu.memory_space<vmem>>, vector<1x32xf32>
      %c0_32 = arith.constant 0 : index
      %c0_33 = arith.constant 0 : index
      %36 = vector.load %arg13[%c0_32, %c0_33] : memref<1x32xf32, #tpu.memory_space<vmem>>, vector<1x32xf32>
      %c0_34 = arith.constant 0 : index
      %c0_35 = arith.constant 0 : index
      %37 = vector.load %arg10[%c0_34, %c0_35] : memref<16x32xf32, #tpu.memory_space<vmem>>, vector<16x32xf32>
      %38 = arith.addf %30, %37 : vector<16x32xf32>
      %cst_36 = arith.constant dense<0.000000e+00> : vector<16xf32>
      %39 = vector.multi_reduction <add>, %38, %cst_36 [1] : vector<16x32xf32> to vector<16xf32>
      %40 = vector.shape_cast %39 : vector<16xf32> to vector<16x1xf32>
      %cst_37 = arith.constant 3.200000e+01 : f32
      %41 = vector.broadcast %cst_37 : f32 to vector<16x1xf32>
      %42 = arith.divf %40, %41 : vector<16x1xf32>
      %43 = vector.broadcast %42 : vector<16x1xf32> to vector<16x32xf32>
      %44 = arith.subf %38, %43 : vector<16x32xf32>
      %45 = arith.mulf %44, %44 : vector<16x32xf32>
      %cst_38 = arith.constant dense<0.000000e+00> : vector<16xf32>
      %46 = vector.multi_reduction <add>, %45, %cst_38 [1] : vector<16x32xf32> to vector<16xf32>
      %47 = vector.shape_cast %46 : vector<16xf32> to vector<16x1xf32>
      %cst_39 = arith.constant 3.200000e+01 : f32
      %48 = vector.broadcast %cst_39 : f32 to vector<16x1xf32>
      %49 = arith.divf %47, %48 : vector<16x1xf32>
      %50 = vector.broadcast %42 : vector<16x1xf32> to vector<16x32xf32>
      %51 = arith.subf %38, %50 : vector<16x32xf32>
      %cst_40 = arith.constant 9.99999974E-6 : f32
      %52 = vector.broadcast %cst_40 : f32 to vector<16x1xf32>
      %53 = arith.addf %49, %52 : vector<16x1xf32>
      %54 = math.rsqrt %53 : vector<16x1xf32>
      %55 = vector.broadcast %54 : vector<16x1xf32> to vector<16x32xf32>
      %56 = arith.mulf %51, %55 : vector<16x32xf32>
      %57 = vector.broadcast %35 : vector<1x32xf32> to vector<16x32xf32>
      %58 = arith.mulf %56, %57 : vector<16x32xf32>
      %59 = vector.broadcast %36 : vector<1x32xf32> to vector<16x32xf32>
      %60 = arith.addf %58, %59 : vector<16x32xf32>
      %c0_41 = arith.constant 0 : index
      %c0_42 = arith.constant 0 : index
      %61 = vector.load %arg11[%c0_41, %c0_42] : memref<16x32xf32, #tpu.memory_space<vmem>>, vector<16x32xf32>
      %62 = arith.addf %34, %61 : vector<16x32xf32>
      %cst_43 = arith.constant dense<0.000000e+00> : vector<16xf32>
      %63 = vector.multi_reduction <add>, %62, %cst_43 [1] : vector<16x32xf32> to vector<16xf32>
      %64 = vector.shape_cast %63 : vector<16xf32> to vector<16x1xf32>
      %cst_44 = arith.constant 3.200000e+01 : f32
      %65 = vector.broadcast %cst_44 : f32 to vector<16x1xf32>
      %66 = arith.divf %64, %65 : vector<16x1xf32>
      %67 = vector.broadcast %66 : vector<16x1xf32> to vector<16x32xf32>
      %68 = arith.subf %62, %67 : vector<16x32xf32>
      %69 = arith.mulf %68, %68 : vector<16x32xf32>
      %cst_45 = arith.constant dense<0.000000e+00> : vector<16xf32>
      %70 = vector.multi_reduction <add>, %69, %cst_45 [1] : vector<16x32xf32> to vector<16xf32>
      %71 = vector.shape_cast %70 : vector<16xf32> to vector<16x1xf32>
      %cst_46 = arith.constant 3.200000e+01 : f32
      %72 = vector.broadcast %cst_46 : f32 to vector<16x1xf32>
      %73 = arith.divf %71, %72 : vector<16x1xf32>
      %74 = vector.broadcast %66 : vector<16x1xf32> to vector<16x32xf32>
      %75 = arith.subf %62, %74 : vector<16x32xf32>
      %cst_47 = arith.constant 9.99999974E-6 : f32
      %76 = vector.broadcast %cst_47 : f32 to vector<16x1xf32>
      %77 = arith.addf %73, %76 : vector<16x1xf32>
      %78 = math.rsqrt %77 : vector<16x1xf32>
      %79 = vector.broadcast %78 : vector<16x1xf32> to vector<16x32xf32>
      %80 = arith.mulf %75, %79 : vector<16x32xf32>
      %81 = vector.broadcast %35 : vector<1x32xf32> to vector<16x32xf32>
      %82 = arith.mulf %80, %81 : vector<16x32xf32>
      %83 = vector.broadcast %36 : vector<1x32xf32> to vector<16x32xf32>
      %84 = arith.addf %82, %83 : vector<16x32xf32>
      %c0_48 = arith.constant 0 : index
      %c0_49 = arith.constant 0 : index
      %85 = vector.load %arg14[%c0_48, %c0_49] : memref<16x32xf32, #tpu.memory_space<vmem>>, vector<16x32xf32>
      tpu.vector_store %arg14[%c0_48, %c0_49], %60 {strides = array<i32>} : memref<16x32xf32, #tpu.memory_space<vmem>>, vector<16x32xf32>,
      %c0_50 = arith.constant 0 : index
      %c0_51 = arith.constant 0 : index
      %86 = vector.load %arg15[%c0_50, %c0_51] : memref<16x32xf32, #tpu.memory_space<vmem>>, vector<16x32xf32>
      tpu.vector_store %arg15[%c0_50, %c0_51], %84 {strides = array<i32>} : memref<16x32xf32, #tpu.memory_space<vmem>>, vector<16x32xf32>,
    } else {
    }
    return
  }
  func.func @transform_0(%arg0: i32, %arg1: i32, %arg2: i32) -> (i32, i32) {
    %c0_i32 = arith.constant 0 : i32
    return %arg0, %arg2 : i32, i32
  }
  func.func @transform_1(%arg0: i32, %arg1: i32, %arg2: i32) -> (i32, i32) {
    %c0_i32 = arith.constant 0 : i32
    return %arg0, %arg2 : i32, i32
  }
  func.func @transform_2(%arg0: i32, %arg1: i32, %arg2: i32) -> (i32, i32) {
    %c0_i32 = arith.constant 0 : i32
    return %arg2, %arg1 : i32, i32
  }
  func.func @transform_3(%arg0: i32, %arg1: i32, %arg2: i32) -> (i32, i32) {
    %c0_i32 = arith.constant 0 : i32
    return %arg2, %arg1 : i32, i32
  }
  func.func @transform_4(%arg0: i32, %arg1: i32, %arg2: i32) -> (i32, i32) {
    %c0_i32 = arith.constant 0 : i32
    return %arg2, %arg1 : i32, i32
  }
  func.func @transform_5(%arg0: i32, %arg1: i32, %arg2: i32) -> (i32, i32) {
    %c0_i32 = arith.constant 0 : i32
    %c0_i32_0 = arith.constant 0 : i32
    return %c0_i32, %arg1 : i32, i32
  }
  func.func @transform_6(%arg0: i32, %arg1: i32, %arg2: i32) -> (i32, i32) {
    %c0_i32 = arith.constant 0 : i32
    %c0_i32_0 = arith.constant 0 : i32
    return %c0_i32, %arg1 : i32, i32
  }
  func.func @transform_7(%arg0: i32, %arg1: i32, %arg2: i32) -> (i32, i32) {
    %c0_i32 = arith.constant 0 : i32
    return %arg0, %arg1 : i32, i32
  }
  func.func @transform_8(%arg0: i32, %arg1: i32, %arg2: i32) -> (i32, i32) {
    %c0_i32 = arith.constant 0 : i32
    return %arg0, %arg1 : i32, i32
  }
  func.func @transform_9(%arg0: i32, %arg1: i32, %arg2: i32) -> (i32, i32) {
    %c0_i32 = arith.constant 0 : i32
    %c0_i32_0 = arith.constant 0 : i32
    return %c0_i32, %arg1 : i32, i32
  }
  func.func @transform_10(%arg0: i32, %arg1: i32, %arg2: i32) -> (i32, i32) {
    %c0_i32 = arith.constant 0 : i32
    %c0_i32_0 = arith.constant 0 : i32
    return %c0_i32, %arg1 : i32, i32
  }
  func.func @transform_11(%arg0: i32, %arg1: i32, %arg2: i32) -> (i32, i32) {
    %c0_i32 = arith.constant 0 : i32
    return %arg0, %arg1 : i32, i32
  }
  func.func @transform_12(%arg0: i32, %arg1: i32, %arg2: i32) -> (i32, i32) {
    %c0_i32 = arith.constant 0 : i32
    return %arg0, %arg1 : i32, i32
  }
}

</mosaic_0001>

<bundles_post_ra>
// kernel: encoder_layer_forward.5
= control target key start
LH: loop header
LB: loop body
LE: loop exit
PB: predicated region body
PF: predicated region fallthrough
CT: control target
= control target key end

     0   :  { %14 = vsyncpa [#allocation5], 0  ;;  %s403_s27 = smov [#allocation4]   ;;  %s522_s0 = inlined_call_operand.vmem [shape: f32[16,32], index: 0, kind: input, shape index: {}]   ;;  %s523_s1 = inlined_call_operand.vmem [shape: f32[16,32], index: 1, kind: input, shape index: {}]   ;;  %s524_s2 = inlined_call_operand.vmem [shape: bf16[32,96], index: 2, kind: input, shape index: {}]   ;;  %s525_s3 = inlined_call_operand.vmem [shape: bf16[32,96], index: 3, kind: input, shape index: {}]   ;;  %s526_s4 = inlined_call_operand.hbm [shape: bf16[32,96], index: 4, kind: input, shape index: {}]   ;;  %s527_s5 = inlined_call_operand.vmem [shape: f32[1,96], index: 5, kind: input, shape index: {}]   ;;  %s528_s6 = inlined_call_operand.vmem [shape: f32[1,96], index: 6, kind: input, shape index: {}]   ;;  %s529_s7 = inlined_call_operand.vmem [shape: bf16[16,96], index: 7, kind: output, shape index: {0}]   ;;  %s530_s8 = inlined_call_operand.vmem [shape: bf16[16,96], index: 8, kind: output, shape index: {1}]  }
   0x1   :  { %s28_s28 = sshll.u32 %s403_s27, 4  ;;  %s379_s9 = scalar_lea.hbm %s526_s4, 256  ;;  %s29_s28 = int_to_ptr.vmem [resolvable:$true] %s28_s28 }
   0x2   :  { %p380_p0 = scmp.ne.s32.totalorder %s526_s4, %s379_s9  ;;  %p383_p1 = scmp.lt.u32.totalorder %s379_s9, %s526_s4 }
   0x4   :  { %p385_p2 = pnand %p383_p1, %p380_p0 }
   0x6   :  { %388 = shalt.err (!%p385_p2)
}
   0x7   :  { %s389_s14 = scalar_lea.vmem %s29_s28, 256  ;;  %p394_p4 = scmp.lt.s32.totalorder %s29_s28, %s29_s28 }
   0x8   :  { %p390_p3 = scmp.ne.s32.totalorder %s29_s28, %s389_s14  ;;  %p395_p5 = scmp.lt.s32.totalorder %s389_s14, %s389_s14 }
   0xa   :  { %p396_p6 = por %p395_p5, %p394_p4 }
   0xc   :  { %p397_p7 = pnand %p396_p6, %p390_p3 }
   0xe   :  { %400 = shalt.err (!%p397_p7)
}
   0xf   :  { %s404_s15 = smov 64   ;;  %s405_s16 = smov 4  }
  0x10   :  { %34 = dma.hbm_to_vmem [thread:$0]  %s526_s4, 256, %s29_s28, [#allocation5], %s404_s15, %s404_s15, %s405_s16  }
  0x11   :  { %401 = dma.done.wait [#allocation5], 256  }
  0x12   :  { %402 = vsyncadd [#allocation5], 4294967040  ;;  %v406_v0 = vmov 0.0   ;;  %vm407_vm0 = vmmov 0   ;;  %v373_v1 = vld [vmem:[%s524_s2] sm:$0xff]   ;;  %v375_v3 = vld [vmem:[%s524_s2 + $0x8] sm:$0xff]  }
  0x13   :  { %344 = vmatprep.subr.bf16.mxu0 %v406_v0  ;;  %352 = vmatprep.subr.bf16.mxu1 %v406_v0  ;;  %v374_v2 = vld [vmem:[%s525_s3] sm:$0xff]   ;;  %v376_v4 = vld [vmem:[%s525_s3 + $0x8] sm:$0xff]   ;;  %vm77_vm1 = vcmask 261120   ;;  %vm47_vm2 = vcmask 785408   ;;  %vm294_vm3 = vcmask 781312  }
  0x14   :  { %348 = vmatprep.mubr.msk.bf16.mxu0 %vm407_vm0, %v406_v0  ;;  %356 = vmatprep.mubr.msk.bf16.mxu1 %vm407_vm0, %v406_v0  ;;  %v52_v5 = vld [vmem:[%s522_s0] sm:$0xff]  ;;  %v53_v6 = vld [vmem:[%s522_s0 + $0x8] sm:$0xff]  ;;  %48 = vst.msk [vmem:[#allocation2] sm:$0xff] %vm47_vm2, %v406_v0  ;;  %49 = vst.msk [vmem:[#allocation2 + $0x8] sm:$0xff] %vm47_vm2, %v406_v0 }
  0x15   :  { %345 = vmatpush3.bf16.msra.mxu0 %v373_v1  ;;  %353 = vmatpush3.bf16.msra.mxu1 %v374_v2  ;;  %v54_v7 = vld [vmem:[%s523_s1] sm:$0xff]  ;;  %v56_v8 = vpack.c.bf16 %v53_v6, %v52_v5  ;;  %v55_v9 = vld [vmem:[%s523_s1 + $0x8] sm:$0xff]  ;;  %50 = vst.msk [vmem:[#allocation3] sm:$0xff] %vm47_vm2, %v406_v0  ;;  %51 = vst.msk [vmem:[#allocation3 + $0x8] sm:$0xff] %vm47_vm2, %v406_v0 }
  0x16   :  { %346 = vmatprep.subr.bf16.mxu0 %v406_v0  ;;  %354 = vmatprep.subr.bf16.mxu1 %v406_v0  ;;  %v57_v10 = vpack.c.bf16 %v55_v9, %v54_v7  ;;  %v377_v11 = vld [vmem:[#allocation4] sm:$0xff]   ;;  %v58_v12 = vadd.f32 %v54_v7, %v52_v5  ;;  %v59_v13 = vadd.f32 %v55_v9, %v53_v6  ;;  %v378_v14 = vld [vmem:[#allocation4 + $0x8] sm:$0xff]  }
  0x17   :  { %v325_v35 = vld [vmem:[%s527_s5] ss:$0 sm:$0xff] }
  0x18   :  { %v60_v15 = vpack.c.bf16 %v59_v13, %v58_v12  ;;  %v326_v49 = vld [vmem:[%s528_s6] ss:$0 sm:$0xff] }
  0x19   :  { %347 = vmatpush3.bf16.msra.mxu0 %v375_v3  ;;  %355 = vmatpush3.bf16.msra.mxu1 %v376_v4 }
  0x1a   :  { %360 = vmatprep.subr.bf16.mxu0 %v406_v0 }
  0x1b   :  { %v242_v18 = vld [vmem:[#allocation2] sm:$0xff]  ;;  %v243_v24 = vld [vmem:[#allocation2 + $0x8] sm:$0xff] }
  0x1c   :  { %349 = vmatmul.mubr.msk.bf16.vlgmr.msra.gmra.mrb[0].mxu0 %vm77_vm1, %v56_v8  ;;  %357 = vmatmul.mubr.msk.bf16.vlgmr.msra.gmra.mrb[0].mxu1 %vm77_vm1, %v57_v10  ;;  %v251_v33 = vld [vmem:[#allocation3] sm:$0xff]  ;;  %v252_v39 = vld [vmem:[#allocation3 + $0x8] sm:$0xff] }
  0x1d   :  { %361 = vmatpush3.bf16.msra.mxu0 %v377_v11  ;;  %364 = vmatprep.mubr.msk.bf16.mxu0 %vm407_vm0, %v406_v0 }
  0x1e   :  { %362 = vmatprep.subr.bf16.mxu0 %v406_v0 }
  0x21   :  { %363 = vmatpush3.bf16.msra.mxu0 %v378_v14 }
  0x24   :  { %365 = vmatmul.mubr.msk.bf16.vlgmr.msra.gmra.mrb[4].mxu0 %vm77_vm1, %v60_v15 }
  0xef   :  { %v115_v16 = vpop.f32.mrb[0].mxu0  ;;  %v175_v17 = vpop.f32.mrb[0].mxu1 }
  0xf0   :  { %v350_v19 = vpop.f32.mrb[1].mxu0  ;;  %v244_v20 = vsub.f32 %v115_v16, %v175_v17  ;;  %v358_v21 = vpop.f32.mrb[1].mxu1 }
  0xf1   :  { %v118_v22 = vpop.f32.mrb[2].mxu0  ;;  %v178_v23 = vpop.f32.mrb[2].mxu1 }
  0xf2   :  { %v351_v25 = vpop.f32.mrb[3].mxu0  ;;  %v246_v26 = vadd.f32 %v244_v20, %v242_v18  ;;  %v245_v27 = vsub.f32 %v118_v22, %v178_v23  ;;  %v359_v28 = vpop.f32.mrb[3].mxu1 }
  0xf4   :  { %249 = vst.msk [vmem:[#allocation2] sm:$0xff] %vm47_vm2, %v246_v26  ;;  %v247_v29 = vadd.f32 %v245_v27, %v243_v24 }
  0xf6   :  { %250 = vst.msk [vmem:[#allocation2 + $0x8] sm:$0xff] %vm47_vm2, %v247_v29 }
  0xf7   :  { %v235_v30 = vpop.f32.mrb[4].mxu0 }
  0xf8   :  { %v253_v31 = vsub.f32 %v235_v30, %v115_v16  ;;  %v366_v32 = vpop.f32.mrb[5].mxu0 }
  0xf9   :  { %v238_v34 = vpop.f32.mrb[6].mxu0 }
  0xfa   :  { %v255_v36 = vsub.f32 %v253_v31, %v175_v17  ;;  %v254_v37 = vsub.f32 %v238_v34, %v118_v22  ;;  %v367_v38 = vpop.f32.mrb[7].mxu0 }
  0xfb   :  { %v264_v40 = vld [vmem:[#allocation2] sm:$0xff] }
  0xfc   :  { %v257_v41 = vadd.f32 %v255_v36, %v251_v33  ;;  %v256_v42 = vsub.f32 %v254_v37, %v178_v23  ;;  %v273_v43 = vadd.f32 %v325_v35, %v264_v40 }
  0xfd   :  { %v265_v44 = vld [vmem:[#allocation2 + $0x8] sm:$0xff] }
  0xfe   :  { %259 = vst.msk [vmem:[#allocation3] sm:$0xff] %vm47_vm2, %v257_v41  ;;  %v258_v45 = vadd.f32 %v256_v42, %v252_v39  ;;  %v331_v46 = vpack.c.bf16 %v273_v43, %v273_v43  ;;  %v274_v47 = vadd.f32 %v325_v35, %v265_v44 }
 0x100   :  { %260 = vst.msk [vmem:[#allocation3 + $0x8] sm:$0xff] %vm47_vm2, %v258_v45  ;;  %v332_v48 = vpack.c.bf16 %v274_v47, %v274_v47 }
 0x101   :  { %295 = vst.msk [vmem:[%s529_s7] sm:$0xf] %vm294_vm3, %v331_v46 }
 0x102   :  { %296 = vst.msk [vmem:[%s529_s7 + $0x4] sm:$0xf] %vm294_vm3, %v332_v48 }
 0x105   :  { %v275_v50 = vld [vmem:[#allocation3] sm:$0xff] }
 0x106   :  { %v284_v51 = vadd.f32 %v326_v49, %v275_v50 }
 0x107   :  { %v276_v52 = vld [vmem:[#allocation3 + $0x8] sm:$0xff] }
 0x108   :  { %v333_v53 = vpack.c.bf16 %v284_v51, %v284_v51  ;;  %v285_v54 = vadd.f32 %v326_v49, %v276_v52 }
 0x10a   :  { %305 = vst.msk [vmem:[%s530_s8] sm:$0xf] %vm294_vm3, %v333_v53  ;;  %v334_v55 = vpack.c.bf16 %v285_v54, %v285_v54 }
 0x10c   :  { %306 = vst.msk [vmem:[%s530_s8 + $0x4] sm:$0xf] %vm294_vm3, %v334_v55 }
 0x10d   :  { %315 = vsyncpa [#allocation5], 1 }

// kernel: encoder_layer_forward.6
= control target key start
LH: loop header
LB: loop body
LE: loop exit
PB: predicated region body
PF: predicated region fallthrough
CT: control target
= control target key end

     0   :  { %s1329_s24 = smov 0   ;;  %s1331_s25 = smov 0   ;;  %s1446_s0 = inlined_call_operand.vmem [shape: bf16[2,12,8,8], index: 0, kind: input, shape index: {}, may-alias: {0,2,4}]   ;;  %s1447_s1 = inlined_call_operand.vmem [shape: bf16[2,12,8,8], index: 1, kind: input, shape index: {}, may-alias: {1,3,5}]   ;;  %s1448_s2 = inlined_call_operand.vmem [shape: bf16[2,12,8,8], index: 2, kind: input, shape index: {}, may-alias: {0,2,4}]   ;;  %s1449_s3 = inlined_call_operand.vmem [shape: bf16[2,12,8,8], index: 3, kind: input, shape index: {}, may-alias: {1,3,5}]   ;;  %s1450_s4 = inlined_call_operand.vmem [shape: bf16[2,12,8,8], index: 4, kind: input, shape index: {}, may-alias: {0,2,4}]   ;;  %s1451_s5 = inlined_call_operand.vmem [shape: bf16[2,12,8,8], index: 5, kind: input, shape index: {}, may-alias: {1,3,5}]   ;;  %s1452_s6 = inlined_call_operand.vmem [shape: bf16[2,4,8,8], index: 6, kind: output, shape index: {0}]   ;;  %s1453_s7 = inlined_call_operand.vmem [shape: bf16[2,4,8,8], index: 7, kind: output, shape index: {1}]  }
   0x1   :  { %s1333_s26 = smov 0   ;;  %s1335_s27 = smov 0  }
   0x2   :  { %s1337_s28 = smov 0  }
   0x3 LB: > { %s40_s29 = sadd.s32 1, %s1275_s26  ;;  %s44_s30 = sadd.s32 1, %s1279_s27  ;;  %s1283_s28 = sphi %s1337_s28, %s18_s28   ;;  %s1279_s27 = sphi %s1335_s27, %s1457_s27   ;;  %s1275_s26 = sphi %s1333_s26, %s1456_s26   ;;  %s1271_s25 = sphi %s1331_s25, %s1455_s25   ;;  %s1267_s24 = sphi %s1329_s24, %s1454_s24  }
   0x4   : > { %p42_p0 = scmp.ge.s32.totalorder %s40_s29, 4  ;;  %p1139_p1 = scmp.ge.s32.totalorder %s1283_s28, 1 }
   0x5   : > { %p400_p2 = scmp.lt.s32.totalorder %s1283_s28, 9 }
   0x6   : > { %s1459_s29 = smov (%p42_p0, %s40_s29), 0  ;;  %s1461_s30 = smov (!%p42_p0, %s44_s30), %s1279_s27 }
   0x7   : > { %p401_p3 = pnand %p1139_p1, %p400_p2  ;;  %p46_p4 = scmp.ge.s32.totalorder %s1461_s30, 2 }
   0x8   : > { %p514_p5 = scmp.lt.s32.totalorder (!%p401_p3), %s1271_s25, 1  ;;  %s536_s8 = sadd.s32 (!%p401_p3), 4, %s1267_s24  ;;  %vm618_vm0 = vcmask (!%p401_p3), 64512   ;;  %v1285_v0 = vmov (!%p401_p3), 0.0   ;;  %vm1286_vm1 = vmmov (!%p401_p3), 0   ;;  %vm615_vm2 = vcmask (!%p401_p3), 7168  }
   0x9   : > { %s1463_s30 = smov (%p46_p4, %s1461_s30), 0  ;;  %404 = sbr.rel (%p401_p3) target bundleno = 840 (0x348), region = 44 }
   0xa   : > { %1164 = vmatprep.subr.bf16.mxu0 (!%p401_p3), %v1285_v0  ;;  %p539_p6 = scmp.lt.s32.totalorder (!%p401_p3), %s536_s8, 11  ;;  %619 = vst.msk [vmem:[#allocation4] sm:$0xff] (!%p401_p3), %vm618_vm0, %v1285_v0  ;;  %620 = vst.msk [vmem:[#allocation5] sm:$0xff] (!%p401_p3), %vm618_vm0, %v1285_v0  ;;  %1166 = vmatprep.mubr.msk.bf16.mxu0 (!%p401_p3), %vm1286_vm1, %v1285_v0  ;;  %p516_p7 = scmp.lt.s32.totalorder (!%p401_p3), %s1267_s24, 11  ;;  %v1287_v7 = vmov (!%p401_p3), -inf   ;;  %v1288_v13 = vmov (!%p401_p3), 0  }
   0xb   : > { %1176 = vmatprep.subr.bf16.mxu1 (!%p401_p3), %v1285_v0  ;;  %1178 = vmatprep.mubr.msk.bf16.mxu1 (!%p401_p3), %vm1286_vm1, %v1285_v0  ;;  %616 = vst.msk [vmem:[#allocation2] sm:$0xff] (!%p401_p3), %vm615_vm2, %v1287_v7  ;;  %617 = vst.msk [vmem:[#allocation3] sm:$0xff] (!%p401_p3), %vm615_vm2, %v1285_v0  ;;  %vm754_vm3 = vcmask (!%p401_p3), 1043456   ;;  %p590_p9 = scmp.lt.s32.totalorder (!%p401_p3), %s1267_s24, 3  ;;  %vm862_vm4 = vcmask (!%p401_p3), 60416  }
   0xc   : > { %1237 = vset.pattern.permute.xlu0 (!%p401_p3), %v1288_v13  ;;  %1238 = vset.pattern.permute.xlu1 (!%p401_p3), %v1288_v13 }
  0x10   : > { %s1465_s25 = smov (!%p514_p5, %s1271_s25), 1  ;;  %s1467_s8 = smov (!%p539_p6, %s536_s8), 11 }
  0x11   : > { %s1376_s9 = smul.u32 12, %s1465_s25  ;;  %v743_v36 = vld [vmem:[#allocation4] sm:$0xff]  ;;  %v800_v44 = vld [vmem:[#allocation5] sm:$0xff] }
  0x12   : > { %s517_s10 = scalar_select %p516_p7, %s1267_s24, 11  ;;  %v718_v14 = vld [vmem:[#allocation2] sm:$0xff]  ;;  %v734_v30 = vld [vmem:[#allocation3] sm:$0xff] }
  0x13   : > { %s545_s11 = sadd.s32 %s1376_s9, %s1467_s8 }
  0x14   : > { %s1142_s12 = sshll.u32 %s545_s11, 2  ;;  %s522_s13 = sadd.s32 %s1376_s9, %s517_s10 }
  0x15   : > { %s560_s16 = scalar_lea.vmem %s1449_s3, %s1142_s12  ;;  %s1140_s17 = sshll.u32 %s522_s13, 2 }
  0x16   : > { %v624_v1 = vld [vmem:[%s560_s16] sm:$0xf]  ;;  %s547_s20 = scalar_lea.vmem %s1448_s2, %s1142_s12  ;;  %s535_s23 = scalar_lea.vmem %s1447_s1, %s1140_s17 }
  0x17   : > { %v630_v2 = vsel %vm618_vm0, %v624_v1, 0  ;;  %v622_v3 = vld [vmem:[%s547_s20] sm:$0xf]  ;;  %s524_s11 = scalar_lea.vmem %s1446_s0, %s1140_s17  ;;  %s562_s12 = sadd.s32 8, %s1267_s24 }
  0x18   : > { %1165 = vmatpush3.bf16.xpose.msra.mxu0 %v630_v2  ;;  %v623_v4 = vld [vmem:[%s535_s23] sm:$0xf]  ;;  %v676_v5 = vsel %vm618_vm0, %v622_v3, 0  ;;  %p565_p8 = scmp.lt.s32.totalorder %s562_s12, 11  ;;  %s1471_s24 = smov (!%p590_p9, %s1267_s24), 3 }
  0x19   : > { %1170 = vmatprep.subr.bf16.mxu0 %v1285_v0  ;;  %v621_v6 = vld [vmem:[%s524_s11] sm:$0xf] }
  0x1a   : > { %s1469_s12 = smov (!%p565_p8, %s562_s12), 11 }
  0x1b   : > { %s571_s13 = sadd.s32 %s1376_s9, %s1469_s12  ;;  %s1146_s9 = sshll.u32 %s1465_s25, 2 }
  0x1c   : > { %s1144_s14 = sshll.u32 %s571_s13, 2  ;;  %s596_s21 = sadd.s32 %s1146_s9, %s1471_s24 }
  0x1d   : > { %s573_s17 = scalar_lea.vmem %s1450_s4, %s1144_s14  ;;  %s586_s20 = scalar_lea.vmem %s1451_s5, %s1144_s14 }
  0x1e   : > { %v750_v18 = vld [vmem:[%s573_s17] sm:$0xf]  ;;  %s1147_s22 = sshll.u32 %s596_s21, 2 }
  0x1f   : > { %1167 = vmatmul.mubr.msk.bf16.vlgmr.msra.gmra.mrb[0].mxu0 %vm618_vm0, %v623_v4  ;;  %v802_v19 = vld [vmem:[%s586_s20] sm:$0xf]  ;;  %v756_v20 = vsel %vm754_vm3, %v750_v18, 0  ;;  %s598_s10 = scalar_lea.vmem %s1452_s6, %s1147_s22  ;;  %s609_s13 = scalar_lea.vmem %s1453_s7, %s1147_s22 }
  0x20   : > { %1171 = vmatpush3.bf16.xpose.msra.mxu0 %v676_v5  ;;  %1172 = vmatprep.mubr.msk.bf16.mxu0 %vm1286_vm1, %v1285_v0  ;;  %v804_v21 = vsel %vm754_vm3, %v802_v19, 0 }
  0x21   : > { %1177 = vmatpush3.bf16.msra.mxu1 %v756_v20 }
  0x22   : > { %1182 = vmatprep.subr.bf16.mxu1 %v1285_v0 }
  0x2b   : > { %1173 = vmatmul.mubr.msk.bf16.vlgmr.msra.gmra.mrb[0].mxu0 %vm618_vm0, %v621_v6 }
  0xfe   : > { %v712_v8 = vpop.f32.mrb[0].mxu0 }
  0xff   : > { %v1174_v9 = vpop.f32.mrb[1].mxu0  ;;  %v719_v10 = vsel %vm618_vm0, %v712_v8, -inf }
 0x100   : > { %720 = vmax.xlane.f32.xlu0 %v719_v10  ;;  %v715_v11 = vpop.f32.mrb[2].mxu0 }
 0x101   : > { %v1175_v12 = vpop.f32.mrb[3].mxu0 }
 0x18d   : > { %v721_v15 = vpop.xlane.xlu0 %720 }
 0x18e   : > { %v722_v16 = vmax.f32 %v718_v14, %v721_v15 }
 0x190   : > { %v723_v17 = vsub.f32 %v718_v14, %v722_v16  ;;  %848 = vst.msk [vmem:[#allocation2] sm:$0xff] %vm615_vm2, %v722_v16  ;;  %728 = vperm.xlu0 %1237, %v722_v16  }
 0x192   : > { %v724_v28 = vmul.f32 1.442695, %v723_v17 }
 0x20f   : > { %v729_v22 = vpop.permute.xlu0 %728 }
 0x210   : > { %v731_v23 = vsub.f32 %v712_v8, %v729_v22 }
 0x212   : > { %v732_v24 = vmul.f32 1.442695, %v731_v23 }
 0x214   : > { %1239 = vpow2.f32 %v732_v24 }
 0x215   : > { %1241 = vpow2.f32 %v724_v28 }
 0x21e   : > { %v1240_v25 = vpop.eup %1239 }
 0x21f   : > { %v736_v26 = vsel %vm618_vm0, %v1240_v25, 0.0  ;;  %v742_v27 = vpack.c.bf16 %v1240_v25, %v1240_v25  ;;  %v1242_v29 = vpop.eup %1241 }
 0x220   : > { %737 = vadd.xlane.f32.xlu1 %v736_v26  ;;  %v735_v31 = vmul.f32 %v1242_v29, %v734_v30 }
 0x221   : > { %1179 = vmatmul.mubr.msk.bf16.vlgmr.msra.gmra.mrb[0].mxu1 %vm618_vm0, %v742_v27 }
 0x222   : > { %1183 = vmatpush3.bf16.msra.mxu1 %v804_v21  ;;  %1184 = vmatprep.mubr.msk.bf16.mxu1 %vm1286_vm1, %v1285_v0 }
 0x229   : > { %1185 = vmatmul.mubr.msk.bf16.vlgmr.msra.gmra.mrb[4].mxu1 %vm618_vm0, %v742_v27 }
 0x231   : > { %746 = vperm.xlu1 %1238, %v1242_v29  }
 0x2ad   : > { %v738_v32 = vpop.xlane.xlu1 %737 }
 0x2ae   : > { %v739_v33 = vadd.f32 %v738_v32, %v735_v31 }
 0x2b0   : > { %741 = vst.msk [vmem:[#allocation3] sm:$0xff] %vm615_vm2, %v739_v33 }
 0x2b1   : > { %v747_v37 = vpop.permute.xlu1 %746 }
 0x2b2   : > { %v749_v38 = vmul.f32 %v747_v37, %v743_v36  ;;  %v801_v45 = vmul.f32 %v800_v44, %v747_v37 }
 0x2b7   : > { %v852_v34 = vld [vmem:[#allocation3] sm:$0xff] }
 0x2b8   : > { %1243 = vrcp.f32 %v852_v34 }
 0x2c2   : > { %v1244_v35 = vpop.eup %1243 }
 0x2c3   : > { %857 = vperm.xlu1 %1238, %v1244_v35  }
 0x2f4   : > { %v792_v39 = vpop.f32.mrb[0].mxu1 }
 0x2f5   : > { %v798_v40 = vadd.f32 %v792_v39, %v749_v38  ;;  %v1180_v41 = vpop.f32.mrb[1].mxu1 }
 0x2f6   : > { %v795_v42 = vpop.f32.mrb[2].mxu1 }
 0x2f7   : > { %799 = vst.msk [vmem:[#allocation4] sm:$0xff] %vm618_vm0, %v798_v40  ;;  %v1181_v43 = vpop.f32.mrb[3].mxu1 }
 0x2fc   : > { %v840_v46 = vpop.f32.mrb[4].mxu1 }
 0x2fd   : > { %v846_v47 = vadd.f32 %v840_v46, %v801_v45  ;;  %v1186_v48 = vpop.f32.mrb[5].mxu1 }
 0x2fe   : > { %v843_v49 = vpop.f32.mrb[6].mxu1  ;;  %v854_v51 = vld [vmem:[#allocation4] sm:$0xff] }
 0x2ff   : > { %847 = vst.msk [vmem:[#allocation5] sm:$0xff] %vm618_vm0, %v846_v47  ;;  %v1187_v50 = vpop.f32.mrb[7].mxu1 }
 0x306   : > { %v864_v52 = vld [vmem:[#allocation5] sm:$0xff] }
 0x342   : > { %v858_v53 = vpop.permute.xlu1 %857 }
 0x343   : > { %v860_v54 = vmul.f32 %v858_v53, %v854_v51  ;;  %v865_v55 = vmul.f32 %v864_v52, %v858_v53 }
 0x345   : > { %v861_v56 = vpack.c.bf16 %v860_v54, %v860_v54  ;;  %v866_v57 = vpack.c.bf16 %v865_v55, %v865_v55 }
 0x347   : > { %863 = vst.msk [vmem:[%s598_s10] sm:$0xf] %vm862_vm4, %v861_v56  ;;  %867 = vst.msk [vmem:[%s609_s13] sm:$0xf] %vm862_vm4, %v866_v57 }
 0x348 PF: > { %s18_s28 = sadd.s32 1, %s1283_s28   ;;  %s1454_s24 = smov %s1275_s26 }
 0x349   : > { %p15_p10 = scmp.ge.s32.totalorder %s18_s28, 10   ;;  %s1455_s25 = smov %s1279_s27 }
 0x34a   : > { %s1456_s26 = smov %s1459_s29  ;;  %s1457_s27 = smov %s1463_s30 }
 0x34b   :  { %17 = sbr.rel (!%p15_p10) target bundleno = 3 (0x3), region = 109 }

// kernel: encoder_layer_forward.7
= control target key start
LH: loop header
LB: loop body
LE: loop exit
PB: predicated region body
PF: predicated region fallthrough
CT: control target
= control target key end

     0   :  { %v458_v0 = vmov 0.0   ;;  %vm459_vm0 = vmmov 0   ;;  %vm45_vm1 = vcmask 261120   ;;  %s659_s2 = inlined_call_operand.vmem [shape: bf16[32,32], index: 2, kind: input, shape index: {}]   ;;  %s660_s3 = inlined_call_operand.vmem [shape: bf16[32,32], index: 3, kind: input, shape index: {}]   ;;  %s661_s0 = inlined_call_operand.vmem [shape: bf16[16,32], index: 0, kind: input, shape index: {}]   ;;  %s662_s1 = inlined_call_operand.vmem [shape: bf16[16,32], index: 1, kind: input, shape index: {}]   ;;  %s663_s4 = inlined_call_operand.vmem [shape: bf16[32,32], index: 4, kind: input, shape index: {}]   ;;  %s664_s11 = inlined_call_operand.vmem [shape: f32[16,32], index: 11, kind: output, shape index: {0}]   ;;  %s665_s12 = inlined_call_operand.vmem [shape: f32[16,32], index: 12, kind: output, shape index: {1}]   ;;  %s666_s5 = inlined_call_operand.vmem [shape: f32[1,32], index: 5, kind: input, shape index: {}]   ;;  %s667_s7 = inlined_call_operand.vmem [shape: f32[16,32], index: 7, kind: input, shape index: {}]   ;;  %s668_s6 = inlined_call_operand.vmem [shape: f32[1,32], index: 6, kind: input, shape index: {}]   ;;  %s669_s8 = inlined_call_operand.vmem [shape: f32[16,32], index: 8, kind: input, shape index: {}]   ;;  %s670_s9 = inlined_call_operand.vmem [shape: f32[1,32], index: 9, kind: input, shape index: {}]   ;;  %s671_s10 = inlined_call_operand.vmem [shape: f32[1,32], index: 10, kind: input, shape index: {}]  }
   0x1   :  { %414 = vmatprep.subr.bf16.mxu0 %v458_v0  ;;  %422 = vmatprep.subr.bf16.mxu1 %v458_v0  ;;  %v440_v1 = vld [vmem:[%s659_s2] sm:$0xff]   ;;  %v442_v3 = vld [vmem:[%s659_s2 + $0x8] sm:$0xff]   ;;  %46 = vst.msk [vmem:[%s664_s11] sm:$0xff] %vm45_vm1, %v458_v0  ;;  %47 = vst.msk [vmem:[%s664_s11 + $0x8] sm:$0xff] %vm45_vm1, %v458_v0 }
   0x2   :  { %v441_v2 = vld [vmem:[%s660_s3] sm:$0xff]   ;;  %418 = vmatprep.mubr.msk.bf16.mxu0 %vm459_vm0, %v458_v0  ;;  %426 = vmatprep.mubr.msk.bf16.mxu1 %vm459_vm0, %v458_v0  ;;  %v443_v4 = vld [vmem:[%s660_s3 + $0x8] sm:$0xff]   ;;  %48 = vst.msk [vmem:[%s665_s12] sm:$0xff] %vm45_vm1, %v458_v0  ;;  %49 = vst.msk [vmem:[%s665_s12 + $0x8] sm:$0xff] %vm45_vm1, %v458_v0 }
   0x3   :  { %415 = vmatpush3.bf16.msra.mxu0 %v440_v1  ;;  %423 = vmatpush3.bf16.msra.mxu1 %v441_v2  ;;  %v50_v5 = vld [vmem:[%s661_s0] sm:$0xff]   ;;  %v447_v14 = vld [vmem:[%s663_s4 + $0x8] sm:$0xff]  }
   0x4   :  { %416 = vmatprep.subr.bf16.mxu0 %v458_v0  ;;  %424 = vmatprep.subr.bf16.mxu1 %v458_v0  ;;  %v52_v6 = vld [vmem:[%s662_s1] sm:$0xff]   ;;  %v54_v7 = vunpack.c.l.bf16 %v50_v5  ;;  %v55_v8 = vunpack.c.h.bf16 %v50_v5  ;;  %v298_v47 = vld [vmem:[%s667_s7 + $0x8] sm:$0xff] }
   0x5   :  { %v56_v9 = vunpack.c.l.bf16 %v52_v6  ;;  %v57_v10 = vunpack.c.h.bf16 %v52_v6  ;;  %v446_v11 = vld [vmem:[%s663_s4] sm:$0xff]   ;;  %v345_v58 = vld [vmem:[%s669_s8 + $0x8] sm:$0xff] }
   0x6   :  { %v401_v38 = vld [vmem:[%s666_s5] ss:$0 sm:$0xff] }
   0x7   :  { %417 = vmatpush3.bf16.msra.mxu0 %v442_v3  ;;  %425 = vmatpush3.bf16.msra.mxu1 %v443_v4  ;;  %v58_v12 = vadd.f32 %v56_v9, %v54_v7  ;;  %v59_v13 = vadd.f32 %v57_v10, %v55_v8  ;;  %v297_v43 = vld [vmem:[%s667_s7] sm:$0xff] }
   0x8   :  { %430 = vmatprep.subr.bf16.mxu0 %v458_v0  ;;  %v252_v18 = vld [vmem:[%s664_s11] sm:$0xff]  ;;  %v253_v24 = vld [vmem:[%s664_s11 + $0x8] sm:$0xff] }
   0x9   :  { %v60_v15 = vpack.c.bf16 %v59_v13, %v58_v12  ;;  %v260_v33 = vld [vmem:[%s665_s12] sm:$0xff]  ;;  %v261_v39 = vld [vmem:[%s665_s12 + $0x8] sm:$0xff] }
   0xa   :  { %419 = vmatmul.mubr.msk.bf16.vlgmr.msra.gmra.mrb[0].mxu0 %vm45_vm1, %v50_v5  ;;  %427 = vmatmul.mubr.msk.bf16.vlgmr.msra.gmra.mrb[0].mxu1 %vm45_vm1, %v52_v6  ;;  %v402_v52 = vld [vmem:[%s668_s6] ss:$0 sm:$0xff] }
   0xb   :  { %431 = vmatpush3.bf16.msra.mxu0 %v446_v11  ;;  %434 = vmatprep.mubr.msk.bf16.mxu0 %vm459_vm0, %v458_v0  ;;  %v344_v55 = vld [vmem:[%s669_s8] sm:$0xff] }
   0xc   :  { %432 = vmatprep.subr.bf16.mxu0 %v458_v0 }
   0xf   :  { %433 = vmatpush3.bf16.msra.mxu0 %v447_v14 }
  0x12   :  { %435 = vmatmul.mubr.msk.bf16.vlgmr.msra.gmra.mrb[4].mxu0 %vm45_vm1, %v60_v15 }
  0xdd   :  { %v120_v16 = vpop.f32.mrb[0].mxu0  ;;  %v185_v17 = vpop.f32.mrb[0].mxu1 }
  0xde   :  { %v420_v19 = vpop.f32.mrb[1].mxu0  ;;  %v254_v20 = vsub.f32 %v120_v16, %v185_v17  ;;  %v428_v21 = vpop.f32.mrb[1].mxu1 }
  0xdf   :  { %v123_v22 = vpop.f32.mrb[2].mxu0  ;;  %v188_v23 = vpop.f32.mrb[2].mxu1 }
  0xe0   :  { %v421_v25 = vpop.f32.mrb[3].mxu0  ;;  %v256_v26 = vadd.f32 %v254_v20, %v252_v18  ;;  %v255_v27 = vsub.f32 %v123_v22, %v188_v23  ;;  %v429_v28 = vpop.f32.mrb[3].mxu1 }
  0xe2   :  { %258 = vst.msk [vmem:[%s664_s11] sm:$0xff] %vm45_vm1, %v256_v26  ;;  %v257_v29 = vadd.f32 %v255_v27, %v253_v24 }
  0xe4   :  { %259 = vst.msk [vmem:[%s664_s11 + $0x8] sm:$0xff] %vm45_vm1, %v257_v29 }
  0xe5   :  { %v245_v30 = vpop.f32.mrb[4].mxu0 }
  0xe6   :  { %v262_v31 = vsub.f32 %v245_v30, %v120_v16  ;;  %v436_v32 = vpop.f32.mrb[5].mxu0 }
  0xe7   :  { %v248_v34 = vpop.f32.mrb[6].mxu0  ;;  %v403_v32 = vld [vmem:[%s670_s9] ss:$0 sm:$0xff] }
  0xe8   :  { %v264_v35 = vsub.f32 %v262_v31, %v185_v17  ;;  %v263_v36 = vsub.f32 %v248_v34, %v123_v22  ;;  %v437_v37 = vpop.f32.mrb[7].mxu0 }
  0xe9   :  { %v273_v42 = vld [vmem:[%s664_s11] sm:$0xff] }
  0xea   :  { %v266_v40 = vadd.f32 %v264_v35, %v260_v33  ;;  %v265_v41 = vsub.f32 %v263_v36, %v188_v23  ;;  %v282_v44 = vadd.f32 %v401_v38, %v273_v42  ;;  %v404_v35 = vld [vmem:[%s671_s10] ss:$0 sm:$0xff] }
  0xeb   :  { %v274_v46 = vld [vmem:[%s664_s11 + $0x8] sm:$0xff] }
  0xec   :  { %268 = vst.msk [vmem:[%s665_s12] sm:$0xff] %vm45_vm1, %v266_v40  ;;  %v267_v45 = vadd.f32 %v265_v41, %v261_v39  ;;  %v299_v48 = vadd.f32 %v297_v43, %v282_v44  ;;  %v283_v49 = vadd.f32 %v401_v38, %v274_v46 }
  0xee   :  { %269 = vst.msk [vmem:[%s665_s12 + $0x8] sm:$0xff] %vm45_vm1, %v267_v45  ;;  %v301_v50 = vsel %vm45_vm1, %v299_v48, 0.0  ;;  %v300_v51 = vadd.f32 %v298_v47, %v283_v49 }
  0xef   :  { %302 = vadd.xlane.f32.xlu0 %v301_v50 }
  0xf0   :  { %v304_v53 = vsel %vm45_vm1, %v300_v51, 0.0 }
  0xf3   :  { %v284_v54 = vld [vmem:[%s665_s12] sm:$0xff]  ;;  %305 = vadd.xlane.f32.xlu0 %v304_v53 }
  0xf4   :  { %v293_v56 = vadd.f32 %v402_v52, %v284_v54 }
  0xf5   :  { %v285_v57 = vld [vmem:[%s665_s12 + $0x8] sm:$0xff] }
  0xf6   :  { %v346_v59 = vadd.f32 %v344_v55, %v293_v56  ;;  %v294_v60 = vadd.f32 %v402_v52, %v285_v57 }
  0xf8   :  { %v348_v61 = vsel %vm45_vm1, %v346_v59, 0.0  ;;  %v347_v62 = vadd.f32 %v345_v58, %v294_v60 }
  0xf9   :  { %349 = vadd.xlane.f32.xlu1 %v348_v61 }
  0xfa   :  { %v351_v63 = vsel %vm45_vm1, %v347_v62, 0.0 }
  0xfd   :  { %352 = vadd.xlane.f32.xlu1 %v351_v63 }
 0x17c   :  { %v303_v0 = vpop.xlane.xlu0 %302 }
 0x17d   :  { %v308_v1 = vmul.f32 0.03125, %v303_v0 }
 0x17f   :  { %v310_v2 = vsub.f32 %v299_v48, %v308_v1 }
 0x180   :  { %v306_v3 = vpop.xlane.xlu0 %305 }
 0x181   :  { %v309_v4 = vmul.f32 0.03125, %v306_v3  ;;  %v312_v5 = vmul.f32 %v310_v2, %v310_v2 }
 0x183   :  { %v311_v6 = vsub.f32 %v300_v51, %v309_v4  ;;  %v314_v7 = vsel %vm45_vm1, %v312_v5, 0.0 }
 0x184   :  { %315 = vadd.xlane.f32.xlu0 %v314_v7 }
 0x185   :  { %v313_v9 = vmul.f32 %v311_v6, %v311_v6 }
 0x186   :  { %v350_v8 = vpop.xlane.xlu1 %349 }
 0x187   :  { %v354_v10 = vmul.f32 0.03125, %v350_v8  ;;  %v317_v11 = vsel %vm45_vm1, %v313_v9, 0.0 }
 0x188   :  { %318 = vadd.xlane.f32.xlu1 %v317_v11 }
 0x189   :  { %v356_v12 = vsub.f32 %v346_v59, %v354_v10 }
 0x18a   :  { %v353_v13 = vpop.xlane.xlu1 %352 }
 0x18b   :  { %v355_v14 = vmul.f32 0.03125, %v353_v13  ;;  %v358_v15 = vmul.f32 %v356_v12, %v356_v12 }
 0x18d   :  { %v357_v16 = vsub.f32 %v347_v62, %v355_v14  ;;  %v360_v17 = vsel %vm45_vm1, %v358_v15, 0.0 }
 0x18e   :  { %361 = vadd.xlane.f32.xlu0 %v360_v17 }
 0x18f   :  { %v359_v18 = vmul.f32 %v357_v16, %v357_v16 }
 0x191   :  { %v363_v19 = vsel %vm45_vm1, %v359_v18, 0.0 }
 0x192   :  { %364 = vadd.xlane.f32.xlu1 %v363_v19 }
 0x211   :  { %v316_v20 = vpop.xlane.xlu0 %315 }
 0x212   :  { %v320_v21 = vmul.f32 0.03125, %v316_v20 }
 0x214   :  { %v322_v22 = vadd.f32 1e-05, %v320_v21 }
 0x215   :  { %v319_v23 = vpop.xlane.xlu1 %318 }
 0x216   :  { %450 = vrsqrt.f32 %v322_v22  ;;  %v321_v24 = vmul.f32 0.03125, %v319_v23 }
 0x218   :  { %v323_v25 = vadd.f32 1e-05, %v321_v24 }
 0x21a   :  { %452 = vrsqrt.f32 %v323_v25 }
 0x21b   :  { %v362_v26 = vpop.xlane.xlu0 %361 }
 0x21c   :  { %v366_v27 = vmul.f32 0.03125, %v362_v26 }
 0x21e   :  { %v368_v28 = vadd.f32 1e-05, %v366_v27 }
 0x21f   :  { %v365_v29 = vpop.xlane.xlu1 %364 }
 0x220   :  { %454 = vrsqrt.f32 %v368_v28  ;;  %v367_v30 = vmul.f32 0.03125, %v365_v29  ;;  %v451_v31 = vpop.eup %450 }
 0x221   :  { %v326_v33 = vmul.f32 %v451_v31, %v310_v2 }
 0x222   :  { %v369_v34 = vadd.f32 1e-05, %v367_v30 }
 0x223   :  { %v334_v36 = vmul.f32 %v403_v32, %v326_v33 }
 0x224   :  { %456 = vrsqrt.f32 %v369_v34  ;;  %v453_v37 = vpop.eup %452 }
 0x225   :  { %v342_v38 = vadd.f32 %v404_v35, %v334_v36  ;;  %v327_v39 = vmul.f32 %v453_v37, %v311_v6 }
 0x227   :  { %378 = vst.msk [vmem:[%s664_s11] sm:$0xff] %vm45_vm1, %v342_v38  ;;  %v335_v40 = vmul.f32 %v403_v32, %v327_v39 }
 0x229   :  { %v343_v42 = vadd.f32 %v404_v35, %v335_v40 }
 0x22a   :  { %v455_v41 = vpop.eup %454 }
 0x22b   :  { %v372_v43 = vmul.f32 %v455_v41, %v356_v12  ;;  %379 = vst.msk [vmem:[%s664_s11 + $0x8] sm:$0xff] %vm45_vm1, %v343_v42 }
 0x22d   :  { %v374_v44 = vmul.f32 %v403_v32, %v372_v43 }
 0x22e   :  { %v457_v45 = vpop.eup %456 }
 0x22f   :  { %v376_v46 = vadd.f32 %v404_v35, %v374_v44  ;;  %v373_v47 = vmul.f32 %v457_v45, %v357_v16 }
 0x231   :  { %380 = vst.msk [vmem:[%s665_s12] sm:$0xff] %vm45_vm1, %v376_v46  ;;  %v375_v48 = vmul.f32 %v403_v32, %v373_v47 }
 0x233   :  { %v377_v49 = vadd.f32 %v404_v35, %v375_v48 }
 0x235   :  { %381 = vst.msk [vmem:[%s665_s12 + $0x8] sm:$0xff] %vm45_vm1, %v377_v49 }

// kernel: encoder_layer_forward.8
= control target key start
LH: loop header
LB: loop body
LE: loop exit
PB: predicated region body
PF: predicated region fallthrough
CT: control target
= control target key end

     0   :  { %v365_v0 = vmov 0.0   ;;  %vm366_vm0 = vmmov 0   ;;  %vm63_vm1 = vcmask 261120   ;;  %vm33_vm2 = vcmask 523264   ;;  %s475_s2 = inlined_call_operand.vmem [shape: bf16[32,64], index: 2, kind: input, shape index: {}]   ;;  %s476_s3 = inlined_call_operand.vmem [shape: bf16[32,64], index: 3, kind: input, shape index: {}]   ;;  %s477_s0 = inlined_call_operand.vmem [shape: f32[16,32], index: 0, kind: input, shape index: {}]   ;;  %s478_s1 = inlined_call_operand.vmem [shape: f32[16,32], index: 1, kind: input, shape index: {}]   ;;  %s479_s4 = inlined_call_operand.vmem [shape: bf16[32,64], index: 4, kind: input, shape index: {}]   ;;  %s480_s5 = inlined_call_operand.vmem [shape: f32[1,64], index: 5, kind: input, shape index: {}]   ;;  %s481_s7 = inlined_call_operand.vmem [shape: bf16[16,64], index: 7, kind: output, shape index: {0}]   ;;  %s482_s6 = inlined_call_operand.vmem [shape: f32[1,64], index: 6, kind: input, shape index: {}]   ;;  %s483_s8 = inlined_call_operand.vmem [shape: bf16[16,64], index: 8, kind: output, shape index: {1}]  }
   0x1   :  { %333 = vmatprep.subr.bf16.mxu0 %v365_v0  ;;  %341 = vmatprep.subr.bf16.mxu1 %v365_v0  ;;  %v359_v1 = vld [vmem:[%s475_s2] sm:$0xff]   ;;  %v361_v3 = vld [vmem:[%s475_s2 + $0x8] sm:$0xff]   ;;  %34 = vst.msk [vmem:[#allocation2] sm:$0xff] %vm33_vm2, %v365_v0  ;;  %35 = vst.msk [vmem:[#allocation2 + $0x8] sm:$0xff] %vm33_vm2, %v365_v0  ;;  %vm284_vm3 = vcmask 519168  }
   0x2   :  { %v360_v2 = vld [vmem:[%s476_s3] sm:$0xff]   ;;  %337 = vmatprep.mubr.msk.bf16.mxu0 %vm366_vm0, %v365_v0  ;;  %345 = vmatprep.mubr.msk.bf16.mxu1 %vm366_vm0, %v365_v0  ;;  %v362_v4 = vld [vmem:[%s476_s3 + $0x8] sm:$0xff]   ;;  %36 = vst.msk [vmem:[#allocation3] sm:$0xff] %vm33_vm2, %v365_v0  ;;  %37 = vst.msk [vmem:[#allocation3 + $0x8] sm:$0xff] %vm33_vm2, %v365_v0 }
   0x3   :  { %334 = vmatpush3.bf16.msra.mxu0 %v359_v1  ;;  %342 = vmatpush3.bf16.msra.mxu1 %v360_v2  ;;  %v38_v5 = vld [vmem:[%s477_s0] sm:$0xff]  ;;  %v39_v6 = vld [vmem:[%s477_s0 + $0x8] sm:$0xff] }
   0x4   :  { %335 = vmatprep.subr.bf16.mxu0 %v365_v0  ;;  %343 = vmatprep.subr.bf16.mxu1 %v365_v0  ;;  %v40_v7 = vld [vmem:[%s478_s1] sm:$0xff]  ;;  %v42_v8 = vpack.c.bf16 %v39_v6, %v38_v5  ;;  %v41_v9 = vld [vmem:[%s478_s1 + $0x8] sm:$0xff] }
   0x5   :  { %v43_v10 = vpack.c.bf16 %v41_v9, %v40_v7  ;;  %v363_v11 = vld [vmem:[%s479_s4] sm:$0xff]   ;;  %v44_v12 = vadd.f32 %v40_v7, %v38_v5  ;;  %v45_v13 = vadd.f32 %v41_v9, %v39_v6  ;;  %v364_v14 = vld [vmem:[%s479_s4 + $0x8] sm:$0xff]  }
   0x6   :  { %v314_v35 = vld [vmem:[%s480_s5] ss:$0 sm:$0xff] }
   0x7   :  { %336 = vmatpush3.bf16.msra.mxu0 %v361_v3  ;;  %344 = vmatpush3.bf16.msra.mxu1 %v362_v4  ;;  %v46_v15 = vpack.c.bf16 %v45_v13, %v44_v12  ;;  %v315_v51 = vld [vmem:[%s482_s6] ss:$0 sm:$0xff] }
   0x8   :  { %349 = vmatprep.subr.bf16.mxu0 %v365_v0  ;;  %v228_v18 = vld [vmem:[#allocation2] sm:$0xff]  ;;  %v229_v24 = vld [vmem:[#allocation2 + $0x8] sm:$0xff] }
   0x9   :  { %v237_v33 = vld [vmem:[#allocation3] sm:$0xff]  ;;  %v238_v39 = vld [vmem:[#allocation3 + $0x8] sm:$0xff] }
   0xa   :  { %338 = vmatmul.mubr.msk.bf16.vlgmr.msra.gmra.mrb[0].mxu0 %vm63_vm1, %v42_v8  ;;  %346 = vmatmul.mubr.msk.bf16.vlgmr.msra.gmra.mrb[0].mxu1 %vm63_vm1, %v43_v10 }
   0xb   :  { %350 = vmatpush3.bf16.msra.mxu0 %v363_v11  ;;  %353 = vmatprep.mubr.msk.bf16.mxu0 %vm366_vm0, %v365_v0 }
   0xc   :  { %351 = vmatprep.subr.bf16.mxu0 %v365_v0 }
   0xf   :  { %352 = vmatpush3.bf16.msra.mxu0 %v364_v14 }
  0x12   :  { %354 = vmatmul.mubr.msk.bf16.vlgmr.msra.gmra.mrb[4].mxu0 %vm63_vm1, %v46_v15 }
  0xdd   :  { %v101_v16 = vpop.f32.mrb[0].mxu0  ;;  %v161_v17 = vpop.f32.mrb[0].mxu1 }
  0xde   :  { %v339_v19 = vpop.f32.mrb[1].mxu0  ;;  %v230_v20 = vsub.f32 %v101_v16, %v161_v17  ;;  %v347_v21 = vpop.f32.mrb[1].mxu1 }
  0xdf   :  { %v104_v22 = vpop.f32.mrb[2].mxu0  ;;  %v164_v23 = vpop.f32.mrb[2].mxu1 }
  0xe0   :  { %v340_v25 = vpop.f32.mrb[3].mxu0  ;;  %v232_v26 = vadd.f32 %v230_v20, %v228_v18  ;;  %v231_v27 = vsub.f32 %v104_v22, %v164_v23  ;;  %v348_v28 = vpop.f32.mrb[3].mxu1 }
  0xe2   :  { %235 = vst.msk [vmem:[#allocation2] sm:$0xff] %vm33_vm2, %v232_v26  ;;  %v233_v29 = vadd.f32 %v231_v27, %v229_v24 }
  0xe4   :  { %236 = vst.msk [vmem:[#allocation2 + $0x8] sm:$0xff] %vm33_vm2, %v233_v29 }
  0xe5   :  { %v221_v30 = vpop.f32.mrb[4].mxu0 }
  0xe6   :  { %v239_v31 = vsub.f32 %v221_v30, %v101_v16  ;;  %v355_v32 = vpop.f32.mrb[5].mxu0 }
  0xe7   :  { %v224_v34 = vpop.f32.mrb[6].mxu0 }
  0xe8   :  { %v241_v36 = vsub.f32 %v239_v31, %v161_v17  ;;  %v240_v37 = vsub.f32 %v224_v34, %v104_v22  ;;  %v356_v38 = vpop.f32.mrb[7].mxu0 }
  0xe9   :  { %v250_v40 = vld [vmem:[#allocation2] sm:$0xff] }
  0xea   :  { %v243_v41 = vadd.f32 %v241_v36, %v237_v33  ;;  %v242_v42 = vsub.f32 %v240_v37, %v164_v23  ;;  %v259_v43 = vadd.f32 %v314_v35, %v250_v40 }
  0xeb   :  { %v251_v44 = vld [vmem:[#allocation2 + $0x8] sm:$0xff] }
  0xec   :  { %245 = vst.msk [vmem:[#allocation3] sm:$0xff] %vm33_vm2, %v243_v41  ;;  %v244_v45 = vadd.f32 %v242_v42, %v238_v39  ;;  %v272_v46 = vmax.f32 %v259_v43, 0.0  ;;  %v260_v47 = vadd.f32 %v314_v35, %v251_v44 }
  0xee   :  { %246 = vst.msk [vmem:[#allocation3 + $0x8] sm:$0xff] %vm33_vm2, %v244_v45  ;;  %v320_v48 = vpack.c.bf16 %v272_v46, %v272_v46  ;;  %v273_v49 = vmax.f32 %v260_v47, 0.0 }
  0xf0   :  { %285 = vst.msk [vmem:[%s481_s7] sm:$0xf] %vm284_vm3, %v320_v48  ;;  %v321_v50 = vpack.c.bf16 %v273_v49, %v273_v49 }
  0xf2   :  { %286 = vst.msk [vmem:[%s481_s7 + $0x4] sm:$0xf] %vm284_vm3, %v321_v50 }
  0xf3   :  { %v261_v52 = vld [vmem:[#allocation3] sm:$0xff] }
  0xf4   :  { %v270_v53 = vadd.f32 %v315_v51, %v261_v52 }
  0xf5   :  { %v262_v54 = vld [vmem:[#allocation3 + $0x8] sm:$0xff] }
  0xf6   :  { %v274_v55 = vmax.f32 %v270_v53, 0.0  ;;  %v271_v56 = vadd.f32 %v315_v51, %v262_v54 }
  0xf8   :  { %v322_v57 = vpack.c.bf16 %v274_v55, %v274_v55  ;;  %v275_v58 = vmax.f32 %v271_v56, 0.0 }
  0xfa   :  { %295 = vst.msk [vmem:[%s483_s8] sm:$0xf] %vm284_vm3, %v322_v57  ;;  %v323_v59 = vpack.c.bf16 %v275_v58, %v275_v58 }
  0xfc   :  { %296 = vst.msk [vmem:[%s483_s8 + $0x4] sm:$0xf] %vm284_vm3, %v323_v59 }

// kernel: encoder_layer_forward.9
= control target key start
LH: loop header
LB: loop body
LE: loop exit
PB: predicated region body
PF: predicated region fallthrough
CT: control target
= control target key end

     0   :  { %18 = vsyncpa [#allocation3], 0  ;;  %v615_v1 = vmov 0.0   ;;  %vm616_vm0 = vmmov 0   ;;  %s808_s0 = inlined_call_operand.vmem [shape: bf16[16,64], index: 0, kind: input, shape index: {}]   ;;  %s809_s1 = inlined_call_operand.vmem [shape: bf16[16,64], index: 1, kind: input, shape index: {}]   ;;  %s810_s2 = inlined_call_operand.vmem [shape: bf16[64,32], index: 2, kind: input, shape index: {}]   ;;  %s811_s3 = inlined_call_operand.vmem [shape: bf16[64,32], index: 3, kind: input, shape index: {}]   ;;  %s812_s4 = inlined_call_operand.vmem [shape: bf16[64,32], index: 4, kind: input, shape index: {}]   ;;  %s813_s5 = inlined_call_operand.vmem [shape: f32[1,32], index: 5, kind: input, shape index: {}]   ;;  %s814_s6 = inlined_call_operand.vmem [shape: f32[1,32], index: 6, kind: input, shape index: {}]   ;;  %s815_s7 = inlined_call_operand.vmem [shape: f32[16,32], index: 7, kind: input, shape index: {}]   ;;  %s816_s8 = inlined_call_operand.vmem [shape: f32[16,32], index: 8, kind: input, shape index: {}]   ;;  %s817_s9 = inlined_call_operand.vmem [shape: f32[1,32], index: 9, kind: input, shape index: {}]   ;;  %s818_s10 = inlined_call_operand.vmem [shape: f32[1,32], index: 10, kind: input, shape index: {}]   ;;  %s819_s11 = inlined_call_operand.hbm [shape: f32[16,32], index: 11, kind: output, shape index: {0}]   ;;  %s820_s12 = inlined_call_operand.hbm [shape: f32[16,32], index: 12, kind: output, shape index: {1}]  }
   0x1   :  { %v543_v0 = vld [vmem:[%s810_s2] sm:$0xff]   ;;  %501 = vmatprep.subr.bf16.mxu0 %v615_v1  ;;  %513 = vmatprep.subr.bf16.mxu1 %v615_v1  ;;  %v545_v3 = vld [vmem:[%s810_s2 + $0x8] sm:$0xff]   ;;  %v547_v5 = vld [vmem:[%s810_s2 + $0x10] sm:$0xff]  }
   0x2   :  { %v544_v2 = vld [vmem:[%s811_s3] sm:$0xff]   ;;  %502 = vmatpush3.bf16.msra.mxu0 %v543_v0  ;;  %509 = vmatprep.mubr.msk.bf16.mxu0 %vm616_vm0, %v615_v1  ;;  %v546_v4 = vld [vmem:[%s811_s3 + $0x8] sm:$0xff]   ;;  %v548_v6 = vld [vmem:[%s811_s3 + $0x10] sm:$0xff]  }
   0x3   :  { %514 = vmatpush3.bf16.msra.mxu1 %v544_v2  ;;  %503 = vmatprep.subr.bf16.mxu0 %v615_v1  ;;  %v549_v7 = vld [vmem:[%s810_s2 + $0x18] sm:$0xff]   ;;  %v52_v9 = vld [vmem:[%s808_s0] sm:$0xff]  }
   0x4   :  { %515 = vmatprep.subr.bf16.mxu1 %v615_v1  ;;  %521 = vmatprep.mubr.msk.bf16.mxu1 %vm616_vm0, %v615_v1  ;;  %v550_v8 = vld [vmem:[%s811_s3 + $0x18] sm:$0xff]   ;;  %v54_v10 = vld [vmem:[%s809_s1] sm:$0xff]  }
   0x6   :  { %504 = vmatpush3.bf16.msra.mxu0 %v545_v3 }
   0x7   :  { %516 = vmatpush3.bf16.msra.mxu1 %v546_v4  ;;  %505 = vmatprep.subr.bf16.mxu0 %v615_v1 }
   0x8   :  { %517 = vmatprep.subr.bf16.mxu1 %v615_v1 }
   0xa   :  { %506 = vmatpush3.bf16.msra.mxu0 %v547_v5 }
   0xb   :  { %518 = vmatpush3.bf16.msra.mxu1 %v548_v6  ;;  %507 = vmatprep.subr.bf16.mxu0 %v615_v1 }
   0xc   :  { %519 = vmatprep.subr.bf16.mxu1 %v615_v1 }
   0xd   :  { %19 = vsyncpa [#allocation5], 0  ;;  %vm100_vm1 = vcmask 523264   ;;  %v553_v11 = vld [vmem:[%s812_s4] sm:$0xff]   ;;  %v554_v12 = vld [vmem:[%s812_s4 + $0x8] sm:$0xff]   ;;  %v56_v13 = vunpack.c.l.bf16 %v52_v9  ;;  %v57_v14 = vunpack.c.h.bf16 %v52_v9  ;;  %v58_v15 = vunpack.c.l.bf16 %v54_v10  ;;  %s617_s20 = smov [#allocation2]  }
   0xe   :  { %508 = vmatpush3.bf16.msra.mxu0 %v549_v7  ;;  %v59_v16 = vunpack.c.h.bf16 %v54_v10  ;;  %v555_v17 = vld [vmem:[%s812_s4 + $0x10] sm:$0xff]   ;;  %v556_v20 = vld [vmem:[%s812_s4 + $0x18] sm:$0xff]   ;;  %vm47_vm2 = vcmask 261120   ;;  %v482_v36 = vld [vmem:[%s813_s5] ss:$0 sm:$0xff]  ;;  %s438_s21 = sshll.u32 %s617_s20, 4  ;;  %s439_s21 = int_to_ptr.vmem [resolvable:$true] %s438_s21 }
   0xf   :  { %520 = vmatpush3.bf16.msra.mxu1 %v550_v8  ;;  %525 = vmatprep.subr.bf16.mxu0 %v615_v1  ;;  %v60_v18 = vadd.f32 %v58_v15, %v56_v13  ;;  %48 = vst.msk [vmem:[#allocation2] sm:$0xff] %vm47_vm2, %v615_v1  ;;  %49 = vst.msk [vmem:[#allocation2 + $0x8] sm:$0xff] %vm47_vm2, %v615_v1  ;;  %v348_v38 = vld [vmem:[%s815_s7] sm:$0xff]  ;;  %v349_v41 = vld [vmem:[%s815_s7 + $0x8] sm:$0xff]  ;;  %p572_p1 = scmp.lt.s32.totalorder %s439_s21, %s439_s21 }
  0x10   :  { %v61_v19 = vadd.f32 %v59_v16, %v57_v14  ;;  %50 = vst.msk [vmem:[#allocation4] sm:$0xff] %vm47_vm2, %v615_v1  ;;  %51 = vst.msk [vmem:[#allocation4 + $0x8] sm:$0xff] %vm47_vm2, %v615_v1  ;;  %v483_v59 = vld [vmem:[%s814_s6] ss:$0 sm:$0xff]  ;;  %v396_v0 = vld [vmem:[%s816_s8 + $0x8] sm:$0xff] }
  0x11   :  { %510 = vmatmul.mubr.msk.bf16.vlgmr.msra.gmra.mrb[0].mxu0 %vm100_vm1, %v52_v9  ;;  %v395_v61 = vld [vmem:[%s816_s8] sm:$0xff] }
  0x12   :  { %522 = vmatmul.mubr.msk.bf16.vlgmr.msra.gmra.mrb[0].mxu1 %vm100_vm1, %v54_v10  ;;  %526 = vmatpush3.bf16.msra.mxu0 %v553_v11  ;;  %v62_v21 = vpack.c.bf16 %v61_v19, %v60_v18 }
  0x13   :  { %527 = vmatprep.subr.bf16.mxu0 %v615_v1  ;;  %533 = vmatprep.mubr.msk.bf16.mxu0 %vm616_vm0, %v615_v1 }
  0x16   :  { %528 = vmatpush3.bf16.msra.mxu0 %v554_v12  ;;  %v302_v24 = vld [vmem:[#allocation2] sm:$0xff]  ;;  %v303_v30 = vld [vmem:[#allocation2 + $0x8] sm:$0xff] }
  0x17   :  { %529 = vmatprep.subr.bf16.mxu0 %v615_v1  ;;  %v311_v47 = vld [vmem:[#allocation4] sm:$0xff]  ;;  %v312_v54 = vld [vmem:[#allocation4 + $0x8] sm:$0xff] }
  0x1a   :  { %530 = vmatpush3.bf16.msra.mxu0 %v555_v17 }
  0x1b   :  { %531 = vmatprep.subr.bf16.mxu0 %v615_v1 }
  0x1e   :  { %532 = vmatpush3.bf16.msra.mxu0 %v556_v20 }
  0x21   :  { %534 = vmatmul.mubr.msk.bf16.vlgmr.msra.gmra.mrb[4].mxu0 %vm100_vm1, %v62_v21 }
  0xe4   :  { %v138_v22 = vpop.f32.mrb[0].mxu0 }
  0xe5   :  { %v219_v23 = vpop.f32.mrb[0].mxu1  ;;  %v511_v25 = vpop.f32.mrb[1].mxu0 }
  0xe6   :  { %v304_v26 = vsub.f32 %v138_v22, %v219_v23  ;;  %v523_v27 = vpop.f32.mrb[1].mxu1  ;;  %v141_v28 = vpop.f32.mrb[2].mxu0 }
  0xe7   :  { %v222_v29 = vpop.f32.mrb[2].mxu1  ;;  %v512_v31 = vpop.f32.mrb[3].mxu0 }
  0xe8   :  { %v306_v32 = vadd.f32 %v304_v26, %v302_v24  ;;  %v305_v33 = vsub.f32 %v141_v28, %v222_v29  ;;  %v524_v34 = vpop.f32.mrb[3].mxu1 }
  0xea   :  { %309 = vst.msk [vmem:[#allocation2] sm:$0xff] %vm47_vm2, %v306_v32  ;;  %v307_v35 = vadd.f32 %v305_v33, %v303_v30  ;;  %v484_v33 = vld [vmem:[%s817_s9] ss:$0 sm:$0xff]  ;;  %s567_s9 = scalar_lea.vmem %s439_s21, 256 }
  0xeb   :  { %p568_p0 = scmp.ne.s32.totalorder %s439_s21, %s567_s9  ;;  %p573_p2 = scmp.lt.s32.totalorder %s567_s9, %s567_s9 }
  0xec   :  { %310 = vst.msk [vmem:[#allocation2 + $0x8] sm:$0xff] %vm47_vm2, %v307_v35  ;;  %v485_v35 = vld [vmem:[%s818_s10] ss:$0 sm:$0xff] }
  0xed   :  { %p574_p3 = por %p573_p2, %p572_p1 }
  0xef   :  { %p575_p4 = pnand %p574_p3, %p568_p0 }
  0xf1   :  { %v324_v37 = vld [vmem:[#allocation2] sm:$0xff] }
  0xf2   :  { %v333_v39 = vadd.f32 %v482_v36, %v324_v37 }
  0xf3   :  { %v325_v40 = vld [vmem:[#allocation2 + $0x8] sm:$0xff] }
  0xf4   :  { %v295_v42 = vpop.f32.mrb[4].mxu0  ;;  %v350_v43 = vadd.f32 %v348_v38, %v333_v39  ;;  %v334_v44 = vadd.f32 %v482_v36, %v325_v40 }
  0xf5   :  { %v313_v45 = vsub.f32 %v295_v42, %v138_v22  ;;  %v535_v46 = vpop.f32.mrb[5].mxu0 }
  0xf6   :  { %v298_v48 = vpop.f32.mrb[6].mxu0  ;;  %v352_v49 = vsel %vm47_vm2, %v350_v43, 0.0  ;;  %v351_v50 = vadd.f32 %v349_v41, %v334_v44 }
  0xf7   :  { %v315_v51 = vsub.f32 %v313_v45, %v219_v23  ;;  %v314_v52 = vsub.f32 %v298_v48, %v141_v28  ;;  %353 = vadd.xlane.f32.xlu0 %v352_v49  ;;  %v536_v53 = vpop.f32.mrb[7].mxu0 }
  0xf8   :  { %v355_v57 = vsel %vm47_vm2, %v351_v50, 0.0 }
  0xf9   :  { %v317_v55 = vadd.f32 %v315_v51, %v311_v47  ;;  %v316_v56 = vsub.f32 %v314_v52, %v222_v29 }
  0xfb   :  { %319 = vst.msk [vmem:[#allocation4] sm:$0xff] %vm47_vm2, %v317_v55  ;;  %v318_v58 = vadd.f32 %v316_v56, %v312_v54  ;;  %356 = vadd.xlane.f32.xlu0 %v355_v57 }
  0xfd   :  { %320 = vst.msk [vmem:[#allocation4 + $0x8] sm:$0xff] %vm47_vm2, %v318_v58 }
 0x102   :  { %v335_v60 = vld [vmem:[#allocation4] sm:$0xff] }
 0x103   :  { %v344_v62 = vadd.f32 %v483_v59, %v335_v60 }
 0x104   :  { %v336_v63 = vld [vmem:[#allocation4 + $0x8] sm:$0xff] }
 0x105   :  { %v397_v1 = vadd.f32 %v395_v61, %v344_v62  ;;  %v345_v2 = vadd.f32 %v483_v59, %v336_v63 }
 0x107   :  { %v399_v3 = vsel %vm47_vm2, %v397_v1, 0.0  ;;  %v398_v4 = vadd.f32 %v396_v0, %v345_v2 }
 0x108   :  { %400 = vadd.xlane.f32.xlu1 %v399_v3 }
 0x109   :  { %v402_v5 = vsel %vm47_vm2, %v398_v4, 0.0 }
 0x10c   :  { %403 = vadd.xlane.f32.xlu1 %v402_v5 }
 0x184   :  { %v354_v6 = vpop.xlane.xlu0 %353 }
 0x185   :  { %v359_v7 = vmul.f32 0.03125, %v354_v6 }
 0x187   :  { %v361_v8 = vsub.f32 %v350_v43, %v359_v7 }
 0x188   :  { %v357_v9 = vpop.xlane.xlu0 %356 }
 0x189   :  { %v360_v10 = vmul.f32 0.03125, %v357_v9  ;;  %v363_v11 = vmul.f32 %v361_v8, %v361_v8 }
 0x18b   :  { %v362_v12 = vsub.f32 %v351_v50, %v360_v10  ;;  %v365_v13 = vsel %vm47_vm2, %v363_v11, 0.0 }
 0x18c   :  { %366 = vadd.xlane.f32.xlu0 %v365_v13 }
 0x18d   :  { %v364_v14 = vmul.f32 %v362_v12, %v362_v12 }
 0x18f   :  { %v368_v15 = vsel %vm47_vm2, %v364_v14, 0.0 }
 0x190   :  { %369 = vadd.xlane.f32.xlu1 %v368_v15 }
 0x195   :  { %v401_v16 = vpop.xlane.xlu1 %400 }
 0x196   :  { %v405_v17 = vmul.f32 0.03125, %v401_v16 }
 0x198   :  { %v407_v18 = vsub.f32 %v397_v1, %v405_v17 }
 0x199   :  { %v404_v19 = vpop.xlane.xlu1 %403 }
 0x19a   :  { %v406_v20 = vmul.f32 0.03125, %v404_v19  ;;  %v409_v21 = vmul.f32 %v407_v18, %v407_v18 }
 0x19c   :  { %v408_v22 = vsub.f32 %v398_v4, %v406_v20  ;;  %v411_v23 = vsel %vm47_vm2, %v409_v21, 0.0 }
 0x19d   :  { %412 = vadd.xlane.f32.xlu0 %v411_v23 }
 0x19e   :  { %v410_v24 = vmul.f32 %v408_v22, %v408_v22 }
 0x1a0   :  { %v414_v25 = vsel %vm47_vm2, %v410_v24, 0.0 }
 0x1a1   :  { %415 = vadd.xlane.f32.xlu1 %v414_v25 }
 0x219   :  { %v367_v26 = vpop.xlane.xlu0 %366 }
 0x21a   :  { %v371_v27 = vmul.f32 0.03125, %v367_v26 }
 0x21c   :  { %v373_v28 = vadd.f32 1e-05, %v371_v27 }
 0x21d   :  { %v370_v29 = vpop.xlane.xlu1 %369 }
 0x21e   :  { %559 = vrsqrt.f32 %v373_v28  ;;  %v372_v30 = vmul.f32 0.03125, %v370_v29 }
 0x220   :  { %v374_v31 = vadd.f32 1e-05, %v372_v30 }
 0x222   :  { %561 = vrsqrt.f32 %v374_v31 }
 0x228   :  { %v560_v32 = vpop.eup %559 }
 0x229   :  { %v377_v34 = vmul.f32 %v560_v32, %v361_v8 }
 0x22a   :  { %v413_v36 = vpop.xlane.xlu0 %412 }
 0x22b   :  { %v385_v37 = vmul.f32 %v484_v33, %v377_v34  ;;  %v417_v38 = vmul.f32 0.03125, %v413_v36 }
 0x22c   :  { %v562_v39 = vpop.eup %561 }
 0x22d   :  { %v378_v40 = vmul.f32 %v562_v39, %v362_v12  ;;  %v419_v41 = vadd.f32 1e-05, %v417_v38  ;;  %v393_v42 = vadd.f32 %v485_v35, %v385_v37 }
 0x22e   :  { %v416_v43 = vpop.xlane.xlu1 %415 }
 0x22f   :  { %v386_v44 = vmul.f32 %v484_v33, %v378_v40  ;;  %563 = vrsqrt.f32 %v419_v41  ;;  %v418_v45 = vmul.f32 0.03125, %v416_v43  ;;  %429 = vst.msk [vmem:[#allocation2] sm:$0xff] %vm47_vm2, %v393_v42 }
 0x231   :  { %v420_v46 = vadd.f32 1e-05, %v418_v45  ;;  %v394_v47 = vadd.f32 %v485_v35, %v386_v44 }
 0x233   :  { %565 = vrsqrt.f32 %v420_v46  ;;  %430 = vst.msk [vmem:[#allocation2 + $0x8] sm:$0xff] %vm47_vm2, %v394_v47 }
 0x234   :  { %578 = shalt.err (!%p575_p4)
}
 0x235   :  { %s579_s2 = scalar_lea.hbm %s819_s11, 256 }
 0x236   :  { %p580_p5 = scmp.ne.s32.totalorder %s819_s11, %s579_s2  ;;  %p583_p6 = scmp.lt.u32.totalorder %s579_s2, %s819_s11 }
 0x238   :  { %p585_p7 = pnand %p583_p6, %p580_p5 }
 0x23a   :  { %588 = shalt.err (!%p585_p7)
}
 0x23b   :  { %s618_s24 = smov 128   ;;  %s619_s25 = smov 8   ;;  %v564_v48 = vpop.eup %563 }
 0x23c   :  { %444 = dma.vmem_to_hbm [thread:$0]  %s439_s21, 256, %s819_s11, [#allocation3], %s618_s24, %s618_s24, %s619_s25   ;;  %v423_v49 = vmul.f32 %v564_v48, %v407_v18 }
 0x23d   :  { %v566_v51 = vpop.eup %565  ;;  %s620_s27 = smov [#allocation4]  }
 0x23e   :  { %v425_v50 = vmul.f32 %v484_v33, %v423_v49  ;;  %v424_v53 = vmul.f32 %v566_v51, %v408_v22  ;;  %s450_s28 = sshll.u32 %s620_s27, 4  ;;  %s451_s28 = int_to_ptr.vmem [resolvable:$true] %s450_s28 }
 0x23f   :  { %s589_s29 = scalar_lea.vmem %s451_s28, 256  ;;  %p594_p9 = scmp.lt.s32.totalorder %s451_s28, %s451_s28 }
 0x240   :  { %v427_v52 = vadd.f32 %v485_v35, %v425_v50  ;;  %v426_v54 = vmul.f32 %v484_v33, %v424_v53  ;;  %p590_p8 = scmp.ne.s32.totalorder %s451_s28, %s589_s29  ;;  %p595_p10 = scmp.lt.s32.totalorder %s589_s29, %s589_s29 }
 0x242   :  { %431 = vst.msk [vmem:[#allocation4] sm:$0xff] %vm47_vm2, %v427_v52  ;;  %v428_v55 = vadd.f32 %v485_v35, %v426_v54  ;;  %p596_p11 = por %p595_p10, %p594_p9 }
 0x244   :  { %432 = vst.msk [vmem:[#allocation4 + $0x8] sm:$0xff] %vm47_vm2, %v428_v55  ;;  %p597_p12 = pnand %p596_p11, %p590_p8 }
 0x246   :  { %600 = shalt.err (!%p597_p12)
}
 0x247   :  { %s601_s13 = scalar_lea.hbm %s820_s12, 256 }
 0x248   :  { %p602_p13 = scmp.ne.s32.totalorder %s820_s12, %s601_s13  ;;  %p605_p0 = scmp.lt.u32.totalorder %s601_s13, %s820_s12 }
 0x24a   :  { %p607_p1 = pnand %p605_p0, %p602_p13 }
 0x24c   :  { %610 = shalt.err (!%p607_p1)
}
 0x24d   :  { %456 = dma.vmem_to_hbm [thread:$0]  %s451_s28, 256, %s820_s12, [#allocation5], %s618_s24, %s618_s24, %s619_s25  }
 0x24e   :  { %611 = dma.done.wait [#allocation3], 256  }
 0x24f   :  { %612 = vsyncadd [#allocation3], 4294967040 }
 0x250   :  { %613 = dma.done.wait [#allocation5], 256  }
 0x251   :  { %614 = vsyncadd [#allocation5], 4294967040 }
 0x252   :  { %463 = vsyncpa [#allocation3], 1 }
 0x253   :  { %464 = vsyncpa [#allocation5], 1 }

</bundles_post_ra>
